<compile_context>
chip_gen: v7x
topology: tpu7x:2x2x1
jax: 0.10.0
libtpu: 0.0.40
codegen_flags: <defaults>
</compile_context>

<pallas_src>
import functools

import jax
import jax.numpy as jnp
from jax.experimental import pallas as pl
from jax.experimental.pallas import tpu as pltpu


def dan_kernel(emb_ref, w1_ref, b1_ref, w2_ref, b2_ref, out_ref, *,
               inv_seq, num_classes):
    # emb_ref: [Bt, seq, D] bf16   w1_ref: [D, H]  bf16   b1_ref: [1, H]  f32
    # w2_ref:  [H, Cp]      bf16   b2_ref: [1, Cp] f32    out_ref:[Bt, Cp] f32
    emb = emb_ref[...].astype(jnp.float32)                       # [Bt, seq, D]

    # Per-sentence mean of word embeddings (sum * 1/seq, f32 accumulation).
    avg = (jnp.sum(emb, axis=1) * inv_seq).astype(jnp.bfloat16)  # [Bt, D]

    # Hidden layer: ReLU(avg @ W1 + b1)
    h = jnp.dot(avg, w1_ref[...],
                preferred_element_type=jnp.float32) + b1_ref[...]
    h = jnp.maximum(h, 0.0).astype(jnp.bfloat16)                 # [Bt, H]

    # Output layer: h @ W2 + b2  (class axis padded to 128 lanes)
    o = jnp.dot(h, w2_ref[...],
                preferred_element_type=jnp.float32) + b2_ref[...]  # [Bt, Cp]

    # Mask padded class lanes before max / logsumexp.
    lane = jax.lax.broadcasted_iota(jnp.int32, o.shape, 1)
    o = jnp.where(lane < num_classes, o, -1e30)

    # log_softmax over the class axis.
    m = jnp.max(o, axis=-1, keepdims=True)
    z = o - m
    lse = jnp.log(jnp.sum(jnp.exp(z), axis=-1, keepdims=True))
    out_ref[...] = z - lse


def dan_forward(embeds, w1, b1, w2, b2, *, b_tile=128):
    """embeds: [B, seq, D] float32 (already gathered per sentence).
    Returns [B, num_classes] log-probs (float32)."""
    B, seq, D = embeds.shape
    H = w1.shape[1]
    C = w2.shape[1]
    C_PAD = 128                       # lane-dense output slab
    n_tiles = pl.cdiv(B, b_tile)
    B_pad = n_tiles * b_tile

    # Pad batch to a multiple of the tile (zero rows are sliced off later).
    if B_pad != B:
        embeds = jnp.pad(embeds, ((0, B_pad - B), (0, 0), (0, 0)))

    # bf16 feeds for the MXU; biases stay f32.
    embeds_bf = embeds.astype(jnp.bfloat16)
    w1_bf = w1.astype(jnp.bfloat16)
    w2_bf = jnp.zeros((H, C_PAD), jnp.bfloat16).at[:, :C].set(
        w2.astype(jnp.bfloat16))
    b1_f = b1.reshape(1, H).astype(jnp.float32)
    b2_f = jnp.zeros((1, C_PAD), jnp.float32).at[:, :C].set(
        b2.reshape(1, C).astype(jnp.float32))

    kernel = functools.partial(dan_kernel, inv_seq=1.0 / seq, num_classes=C)

    out = pl.pallas_call(
        kernel,
        out_shape=jax.ShapeDtypeStruct((B_pad, C_PAD), jnp.float32),
        grid_spec=pltpu.PrefetchScalarGridSpec(
            num_scalar_prefetch=0,
            grid=(n_tiles,),
            in_specs=[
                # batched embedding slab, tiled over the batch axis
                pl.BlockSpec((b_tile, seq, D), lambda i: (i, 0, 0)),
                # weights / biases: constant index_map -> resident across steps
                pl.BlockSpec((D, H), lambda i: (0, 0)),
                pl.BlockSpec((1, H), lambda i: (0, 0)),
                pl.BlockSpec((H, C_PAD), lambda i: (0, 0)),
                pl.BlockSpec((1, C_PAD), lambda i: (0, 0)),
            ],
            out_specs=pl.BlockSpec((b_tile, C_PAD), lambda i: (i, 0)),
        ),
        compiler_params=pltpu.CompilerParams(
            dimension_semantics=("parallel",)),
    )(embeds_bf, w1_bf, b1_f, w2_bf, b2_f)

    return out[:B, :C]


def make_params(key, vocab_size, embed_dim, hidden_dim, num_classes):
    """Deterministic parameter init mirroring the PyTorch module's __init__."""
    k_emb, k_w1, k_b1, k_w2, k_b2 = jax.random.split(key, 5)

    emb_table = jax.random.normal(k_emb, (vocab_size, embed_dim),
                                  dtype=jnp.float32) * 0.1

    # Xavier-uniform weights, stored [in, out] for the kernel's x @ W.
    def xavier(k, fan_in, fan_out):
        bound = (6.0 / (fan_in + fan_out)) ** 0.5
        return jax.random.uniform(k, (fan_in, fan_out), jnp.float32,
                                  minval=-bound, maxval=bound)

    w1 = xavier(k_w1, embed_dim, hidden_dim)
    w2 = xavier(k_w2, hidden_dim, num_classes)

    # nn.Linear default bias init: U(-1/sqrt(fan_in), 1/sqrt(fan_in))
    b1_bound = 1.0 / (embed_dim ** 0.5)
    b2_bound = 1.0 / (hidden_dim ** 0.5)
    b1 = jax.random.uniform(k_b1, (1, hidden_dim), jnp.float32,
                            minval=-b1_bound, maxval=b1_bound)
    b2 = jax.random.uniform(k_b2, (1, num_classes), jnp.float32,
                            minval=-b2_bound, maxval=b2_bound)
    return emb_table, w1, b1, w2, b2


if __name__ == "__main__":
    vocab_size = 50
    embed_dim = 32
    hidden_dim = 32
    num_classes = 4
    seq = 8
    batch = 256           # batch of sentences; B_TILE = 128 -> grid of 2

    key = jax.random.PRNGKey(0)
    k_params, k_idx = jax.random.split(key)

    emb_table, w1, b1, w2, b2 = make_params(
        k_params, vocab_size, embed_dim, hidden_dim, num_classes)

    # Synthetic word indices for `batch` sentences of `seq` words each
    # (the word -> index mapping lives outside the compute graph).
    word_indices = jax.random.randint(k_idx, (batch, seq), 0, vocab_size)

    # Glue: embedding lookup (gather), equivalent to self.embed_layer(indices).
    embeds = jnp.take(emb_table, word_indices, axis=0)   # [batch, seq, D] f32

    log_probs = dan_forward(embeds, w1, b1, w2, b2, b_tile=128)
    log_probs = jax.block_until_ready(log_probs)

    # Pure-JAX f32 reference for correctness (bf16 matmul feeds -> loose tol).
    avg_ref = jnp.mean(embeds, axis=1)
    h_ref = jnp.maximum(avg_ref @ w1 + b1, 0.0)
    o_ref = h_ref @ w2 + b2
    ref = jax.nn.log_softmax(o_ref, axis=-1)

    assert log_probs.shape == (batch, num_classes)
    # exp(log_probs) rows sum to 1
    row_sums = jnp.sum(jnp.exp(log_probs), axis=-1)
    assert bool(jnp.all(jnp.abs(row_sums - 1.0) < 1e-3))
    assert bool(jnp.allclose(log_probs, ref, atol=5e-2))

    print("KERNEL_OK")
</pallas_src>

<mosaic_0001>
module attributes {stable_mosaic.version = 11 : i64} {
  func.func @dan_kernel(%arg0: i32, %arg1: memref<128x8x32xbf16, #tpu.memory_space<vmem>>, %arg2: memref<32x32xbf16, #tpu.memory_space<vmem>>, %arg3: memref<1x32xf32, #tpu.memory_space<vmem>>, %arg4: memref<32x128xbf16, #tpu.memory_space<vmem>>, %arg5: memref<1x128xf32, #tpu.memory_space<vmem>>, %arg6: memref<128x128xf32, #tpu.memory_space<vmem>>) attributes {dimension_semantics = [#tpu.dimension_semantics<parallel>], iteration_bounds = array<i64: 2>, scalar_prefetch = 0 : i64, scratch_operands = 0 : i64, tpu.core_type = #tpu.core_type<tc>, window_params = [{transform_indices = @transform_0, window_bounds = array<i64: 128, 8, 32>}, {pipeline_mode = #tpu.pipeline_mode<synchronous>, transform_indices = @transform_1, window_bounds = array<i64: 32, 32>}, {pipeline_mode = #tpu.pipeline_mode<synchronous>, transform_indices = @transform_2, window_bounds = array<i64: 1, 32>}, {pipeline_mode = #tpu.pipeline_mode<synchronous>, transform_indices = @transform_3, window_bounds = array<i64: 32, 128>}, {pipeline_mode = #tpu.pipeline_mode<synchronous>, transform_indices = @transform_4, window_bounds = array<i64: 1, 128>}, {transform_indices = @transform_5, window_bounds = array<i64: 128, 128>}]} {
    %c0 = arith.constant 0 : index
    %c0_0 = arith.constant 0 : index
    %c0_1 = arith.constant 0 : index
    %0 = vector.load %arg1[%c0, %c0_0, %c0_1] : memref<128x8x32xbf16, #tpu.memory_space<vmem>>, vector<128x8x32xbf16>
    %1 = arith.extf %0 : vector<128x8x32xbf16> to vector<128x8x32xf32>
    %cst = arith.constant dense<0.000000e+00> : vector<128x32xf32>
    %2 = vector.multi_reduction <add>, %1, %cst [1] : vector<128x8x32xf32> to vector<128x32xf32>
    %cst_2 = arith.constant 1.250000e-01 : f32
    %3 = vector.broadcast %cst_2 : f32 to vector<128x32xf32>
    %4 = arith.mulf %2, %3 : vector<128x32xf32>
    %5 = arith.truncf %4 : vector<128x32xf32> to vector<128x32xbf16>
    %c0_3 = arith.constant 0 : index
    %c0_4 = arith.constant 0 : index
    %6 = vector.load %arg2[%c0_3, %c0_4] : memref<32x32xbf16, #tpu.memory_space<vmem>>, vector<32x32xbf16>
    %cst_5 = arith.constant dense<0.000000e+00> : vector<128x32xf32>
    %7 = tpu.matmul %5, %6, %cst_5 {dimension_numbers = #tpu.dot_dimension_numbers<[1], [0], [0], [1], [0, 0, 1, 1], [], []>} : vector<128x32xbf16>, vector<32x32xbf16>, vector<128x32xf32> -> vector<128x32xf32>
    %c0_6 = arith.constant 0 : index
    %c0_7 = arith.constant 0 : index
    %8 = vector.load %arg3[%c0_6, %c0_7] : memref<1x32xf32, #tpu.memory_space<vmem>>, vector<1x32xf32>
    %9 = vector.broadcast %8 : vector<1x32xf32> to vector<128x32xf32>
    %10 = arith.addf %7, %9 : vector<128x32xf32>
    %cst_8 = arith.constant 0.000000e+00 : f32
    %11 = vector.broadcast %cst_8 : f32 to vector<128x32xf32>
    %12 = arith.maximumf %10, %11 : vector<128x32xf32>
    %13 = arith.truncf %12 : vector<128x32xf32> to vector<128x32xbf16>
    %c0_9 = arith.constant 0 : index
    %c0_10 = arith.constant 0 : index
    %14 = vector.load %arg4[%c0_9, %c0_10] : memref<32x128xbf16, #tpu.memory_space<vmem>>, vector<32x128xbf16>
    %cst_11 = arith.constant dense<0.000000e+00> : vector<128x128xf32>
    %15 = tpu.matmul %13, %14, %cst_11 {dimension_numbers = #tpu.dot_dimension_numbers<[1], [0], [0], [1], [0, 0, 1, 1], [], []>} : vector<128x32xbf16>, vector<32x128xbf16>, vector<128x128xf32> -> vector<128x128xf32>
    %c0_12 = arith.constant 0 : index
    %c0_13 = arith.constant 0 : index
    %16 = vector.load %arg5[%c0_12, %c0_13] : memref<1x128xf32, #tpu.memory_space<vmem>>, vector<1x128xf32>
    %17 = vector.broadcast %16 : vector<1x128xf32> to vector<128x128xf32>
    %18 = arith.addf %15, %17 : vector<128x128xf32>
    %19 = tpu.iota {dimensions = array<i32: 1>} : vector<128x128xi32>
    %c4_i32 = arith.constant 4 : i32
    %20 = vector.broadcast %c4_i32 : i32 to vector<128x128xi32>
    %21 = arith.cmpi slt, %19, %20 : vector<128x128xi32>
    %cst_14 = arith.constant -1.000000e+30 : f32
    %22 = vector.broadcast %cst_14 : f32 to vector<128x128xf32>
    %23 = arith.select %21, %18, %22 : vector<128x128xi1>, vector<128x128xf32>
    %cst_15 = arith.constant dense<0xFF800000> : vector<128xf32>
    %24 = vector.multi_reduction <maximumf>, %23, %cst_15 [1] : vector<128x128xf32> to vector<128xf32>
    %25 = vector.shape_cast %24 : vector<128xf32> to vector<128x1xf32>
    %26 = vector.broadcast %25 : vector<128x1xf32> to vector<128x128xf32>
    %27 = arith.subf %23, %26 : vector<128x128xf32>
    %28 = math.exp %27 : vector<128x128xf32>
    %cst_16 = arith.constant dense<0.000000e+00> : vector<128xf32>
    %29 = vector.multi_reduction <add>, %28, %cst_16 [1] : vector<128x128xf32> to vector<128xf32>
    %30 = vector.shape_cast %29 : vector<128xf32> to vector<128x1xf32>
    %31 = math.log %30 : vector<128x1xf32>
    %32 = vector.broadcast %31 : vector<128x1xf32> to vector<128x128xf32>
    %33 = arith.subf %27, %32 : vector<128x128xf32>
    %c0_17 = arith.constant 0 : index
    %c0_18 = arith.constant 0 : index
    %34 = vector.load %arg6[%c0_17, %c0_18] : memref<128x128xf32, #tpu.memory_space<vmem>>, vector<128x128xf32>
    tpu.vector_store %arg6[%c0_17, %c0_18], %33 {strides = array<i32>} : memref<128x128xf32, #tpu.memory_space<vmem>>, vector<128x128xf32>,
    return
  }
  func.func @transform_0(%arg0: i32) -> (i32, i32, i32) {
    %c0_i32 = arith.constant 0 : i32
    %c0_i32_0 = arith.constant 0 : i32
    %c0_i32_1 = arith.constant 0 : i32
    return %arg0, %c0_i32, %c0_i32_0 : i32, i32, i32
  }
  func.func @transform_1(%arg0: i32) -> (i32, i32) {
    %c0_i32 = arith.constant 0 : i32
    %c0_i32_0 = arith.constant 0 : i32
    %c0_i32_1 = arith.constant 0 : i32
    return %c0_i32, %c0_i32_0 : i32, i32
  }
  func.func @transform_2(%arg0: i32) -> (i32, i32) {
    %c0_i32 = arith.constant 0 : i32
    %c0_i32_0 = arith.constant 0 : i32
    %c0_i32_1 = arith.constant 0 : i32
    return %c0_i32, %c0_i32_0 : i32, i32
  }
  func.func @transform_3(%arg0: i32) -> (i32, i32) {
    %c0_i32 = arith.constant 0 : i32
    %c0_i32_0 = arith.constant 0 : i32
    %c0_i32_1 = arith.constant 0 : i32
    return %c0_i32, %c0_i32_0 : i32, i32
  }
  func.func @transform_4(%arg0: i32) -> (i32, i32) {
    %c0_i32 = arith.constant 0 : i32
    %c0_i32_0 = arith.constant 0 : i32
    %c0_i32_1 = arith.constant 0 : i32
    return %c0_i32, %c0_i32_0 : i32, i32
  }
  func.func @transform_5(%arg0: i32) -> (i32, i32) {
    %c0_i32 = arith.constant 0 : i32
    %c0_i32_0 = arith.constant 0 : i32
    return %arg0, %c0_i32 : i32, i32
  }
}

</mosaic_0001>

<bundles_post_ra>
// kernel: tpu_custom_call.1
= control target key start
LH: loop header
LB: loop body
LE: loop exit
PB: predicated region body
PF: predicated region fallthrough
CT: control target
= control target key end

     0   :  { %10 = vsyncpa [#allocation3], 0  ;;  %s4173_s0 = inlined_call_operand.vmem [shape: bf16[256,8,32], index: 0, kind: input, shape index: {}]   ;;  %s4174_s1 = inlined_call_operand.vmem [shape: bf16[32,32], index: 1, kind: input, shape index: {}]   ;;  %s4175_s2 = inlined_call_operand.vmem [shape: f32[1,32], index: 2, kind: input, shape index: {}]   ;;  %s4176_s3 = inlined_call_operand.vmem [shape: bf16[32,128], index: 3, kind: input, shape index: {}]   ;;  %s4177_s4 = inlined_call_operand.vmem [shape: f32[1,128], index: 4, kind: input, shape index: {}]   ;;  %s4178_s5 = inlined_call_operand.hbm [shape: f32[256,128], index: 5, kind: output, shape index: {}]  }
   0x1   :  { %12 = vsyncpa [#allocation3 + $0x1], 0  ;;  %s3222_s18 = smov 0   ;;  %s3224_s19 = smov 0  }
   0x2   :  { %s3226_s20 = smov 0   ;;  %s3228_s21 = smov 0  }
   0x3 LB: > { %s3243_s22 = sadd.s32 4294967295, %s3187_s21   ;;  %s2602_s23 = sadd.s32 4294967294, %s3187_s21   ;;  %s3187_s21 = sphi %s3228_s21, %s4184_s21   ;;  %s3183_s20 = sphi %s3226_s20, %s4183_s20   ;;  %s3179_s19 = sphi %s3224_s19, %s4182_s19   ;;  %s3175_s18 = sphi %s3222_s18, %s4181_s18  }
   0x4   : > { %s3247_s24 = sadd.s32 1, %s3187_s21   ;;  %s135_s25 = sadd.s32 1, %s3183_s20 }
   0x5   : > { %s132_s26 = ssub.s32 %s3187_s21, %s3247_s24  ;;  %p145_p0 = scmp.ne.s32.totalorder %s3183_s20, %s3179_s19 }
   0x6   : > { %p133_p1 = scmp.eq.s32.totalorder %s132_s26, 0  ;;  %p146_p2 = scmp.eq.s32.totalorder %s3243_s22, 1 }
   0x7   : > { %p151_p3 = scmp.ne.s32.totalorder %s3179_s19, %s3175_s18  ;;  %p152_p4 = scmp.eq.s32.totalorder %s2602_s23, 1 }
   0x8   : > { %s3258_s27 = scalar_select %p133_p1, %s3183_s20, %s135_s25  }
   0x9   : > { %p3260_p5 = por %p146_p2, %p145_p0  ;;  %p3264_p6 = por %p152_p4, %p151_p3 }
   0xa   : > { %p2605_p7 = scmp.ge.s32.totalorder %s3187_s21, 1  ;;  %p191_p8 = scmp.lt.s32.totalorder %s3187_s21, 3 }
   0xc   : > { %p192_p9 = pnand %p2605_p7, %p191_p8 }
   0xd   : > { %v3057_v0 = vld [vmem:[%s4174_s1] sm:$0xff] (!%p192_p9)   ;;  %s2607_s7 = sshll.u32 (!%p192_p9), %s3243_s22, 7  ;;  %v3058_v1 = vld [vmem:[%s4174_s1 + $0x8] sm:$0xff] (!%p192_p9)   ;;  %vm483_vm0 = vcmask (!%p192_p9), 261120   ;;  %vm1903_vm1 = vcmask (!%p192_p9), 1041409   ;;  %vm1905_vm2 = vcmask (!%p192_p9), 1042434  }
   0xe   : > { %195 = sbr.rel (%p192_p9) target bundleno = 1185 (0x4a1), region = 40  ;;  %p220_p10 = scmp.lt.s32.totalorder (!%p192_p9), %s2607_s7, 255  ;;  %2976 = vmatprep.subr.bf16.mxu0 (!%p192_p9), %v3057_v0  ;;  %vm1907_vm3 = vcmask (!%p192_p9), 1043459   ;;  %vm1909_vm4 = vcmask (!%p192_p9), 1044484   ;;  %vm1911_vm5 = vcmask (!%p192_p9), 1045509   ;;  %vm1913_vm6 = vcmask (!%p192_p9), 1046534  }
   0xf   : > { %2977 = vmatpush3.bf16.msra.mxu0 (!%p192_p9), %v3057_v0  ;;  %vm1915_vm7 = vcmask (!%p192_p9), 1047559   ;;  %s216_s6 = sand.u32 (!%p192_p9), 1, %s3179_s19   ;;  %s2636_s9 = sshll.u32 (!%p192_p9), %s3243_s22, 11 }
  0x10   : > { %2978 = vmatprep.subr.bf16.mxu0 (!%p192_p9), %v3058_v1  ;;  %s4132_s22 = scalar_lea.sflag (!%p192_p9), [#allocation3], %s216_s6  ;;  %s3189_s15 = smov (!%p192_p9), [#allocation2]  }
  0x11   : > { %s3129_s16 = sshll.u32 (!%p192_p9), %s3189_s15, 4  ;;  %s3130_s16 = int_to_ptr.vmem [resolvable:$false] %s3129_s16 }
  0x12   : > { %s3131_s17 = scalar_lea.vmem (!%p192_p9), %s3130_s16, 4096 }
  0x13   : > { %2979 = vmatpush3.bf16.msra.mxu0 (!%p192_p9), %v3058_v1 }
  0x15   : > { %s4186_s7 = smov (!%p220_p10, %s2607_s7), 255 }
  0x16   : > { %s2608_s10 = sshll.u32 %s4186_s7, 2  ;;  %s2606_s7 = sshll.u32 %s216_s6, 7 }
  0x17   : > { %s3280_s13 = scalar_lea.vmem %s4173_s0, %s2608_s10  ;;  %s4088_s8 = scalar_lea.vmem [#allocation2], %s2606_s7 }
  0x18   : > { %v2638_v2 = vld [vmem:[%s3280_s13] sm:$0xff]   ;;  %v2893_v3 = vld [vmem:[%s3280_s13 + $0x8] sm:$0xff]   ;;  %v2894_v4 = vld [vmem:[%s3280_s13 + $0x10] sm:$0xff]   ;;  %s2540_s10 = sshll.u32 %s4088_s8, 4  ;;  %s4125_s10 = int_to_ptr.vmem [resolvable:$true] %s2540_s10 }
  0x19   : > { %v2639_v5 = vunpack.c.l.bf16 %v2638_v2  ;;  %v2640_v6 = vunpack.c.h.bf16 %v2638_v2  ;;  %v2643_v7 = vunpack.c.l.bf16 %v2893_v3  ;;  %v2644_v8 = vunpack.c.h.bf16 %v2893_v3  ;;  %v2895_v9 = vld [vmem:[%s3280_s13 + $0x18] sm:$0xff]   ;;  %v3287_v10 = vld [vmem:[%s3280_s13 + $0x20] sm:$0xff]   ;;  %v3290_v11 = vld [vmem:[%s3280_s13 + $0x28] sm:$0xff]   ;;  %s3125_s14 = scalar_lea.vmem %s4125_s10, 2048  ;;  %p3132_p0 = scmp.lt.s32.totalorder %s4125_s10, %s3130_s16 }
  0x1a   : > { %v2647_v12 = vunpack.c.l.bf16 %v2894_v4  ;;  %v2648_v13 = vunpack.c.h.bf16 %v2894_v4  ;;  %v2651_v14 = vunpack.c.l.bf16 %v2895_v9  ;;  %v3293_v15 = vld [vmem:[%s3280_s13 + $0x30] sm:$0xff]   ;;  %v3296_v16 = vld [vmem:[%s3280_s13 + $0x38] sm:$0xff]   ;;  %v2652_v17 = vunpack.c.h.bf16 %v2895_v9  ;;  %p3126_p11 = scmp.ne.s32.totalorder %s4125_s10, %s3125_s14  ;;  %p3133_p1 = scmp.lt.s32.totalorder %s3131_s17, %s3125_s14 }
  0x1b   : > { %v2655_v18 = vunpack.c.l.bf16 %v3287_v10  ;;  %v2656_v19 = vunpack.c.h.bf16 %v3287_v10  ;;  %v2659_v20 = vunpack.c.l.bf16 %v3290_v11  ;;  %v2660_v21 = vunpack.c.h.bf16 %v3290_v11 }
  0x1c   : > { %v2663_v22 = vunpack.c.l.bf16 %v3293_v15  ;;  %v2664_v23 = vunpack.c.h.bf16 %v3293_v15  ;;  %v2667_v24 = vunpack.c.l.bf16 %v3296_v16  ;;  %v484_v25 = vsel %vm483_vm0, %v2639_v5, 0.0  ;;  %p3127_p12 = pnand %p3126_p11, %p3260_p5  ;;  %p3134_p2 = por %p3133_p1, %p3132_p0 }
  0x1d   : > { %v491_v26 = vsel %vm483_vm0, %v2640_v6, 0.0  ;;  %v498_v27 = vsel %vm483_vm0, %v2643_v7, 0.0  ;;  %v505_v28 = vsel %vm483_vm0, %v2644_v8, 0.0  ;;  %v485_v29 = vrot.slane %v484_v25, 4 }
  0x1e   : > { %v492_v30 = vrot.slane %v491_v26, 4  ;;  %v499_v31 = vrot.slane %v498_v27, 4  ;;  %v506_v32 = vrot.slane %v505_v28, 4  ;;  %v512_v33 = vsel %vm483_vm0, %v2647_v12, 0.0  ;;  %p3128_p13 = pneg %p3127_p12 }
  0x1f   : > { %v519_v34 = vsel %vm483_vm0, %v2648_v13, 0.0  ;;  %v526_v35 = vsel %vm483_vm0, %v2651_v14, 0.0  ;;  %v533_v36 = vsel %vm483_vm0, %v2652_v17, 0.0  ;;  %v486_v37 = vadd.f32 %v485_v29, %v484_v25 }
  0x20   : > { %v493_v38 = vadd.f32 %v492_v30, %v491_v26  ;;  %v500_v39 = vadd.f32 %v499_v31, %v498_v27  ;;  %v507_v40 = vadd.f32 %v506_v32, %v505_v28  ;;  %v513_v41 = vrot.slane %v512_v33, 4  ;;  %p3135_p3 = pnand %p3134_p2, %p3128_p13 }
  0x21   : > { %v520_v42 = vrot.slane %v519_v34, 4  ;;  %v527_v43 = vrot.slane %v526_v35, 4  ;;  %v534_v44 = vrot.slane %v533_v36, 4  ;;  %v487_v45 = vrot.slane %v486_v37, 2 }
  0x22   : > { %v494_v46 = vrot.slane %v493_v38, 2  ;;  %v501_v47 = vrot.slane %v500_v39, 2  ;;  %v508_v48 = vrot.slane %v507_v40, 2  ;;  %v514_v49 = vadd.f32 %v513_v41, %v512_v33 }
  0x23   : > { %v521_v50 = vadd.f32 %v520_v42, %v519_v34  ;;  %v528_v51 = vadd.f32 %v527_v43, %v526_v35  ;;  %v535_v52 = vadd.f32 %v534_v44, %v533_v36  ;;  %v488_v53 = vadd.f32 %v487_v45, %v486_v37 }
  0x24   : > { %v495_v54 = vadd.f32 %v494_v46, %v493_v38  ;;  %v502_v55 = vadd.f32 %v501_v47, %v500_v39  ;;  %v509_v56 = vadd.f32 %v508_v48, %v507_v40  ;;  %v515_v57 = vrot.slane %v514_v49, 2 }
  0x25   : > { %v522_v58 = vrot.slane %v521_v50, 2  ;;  %v529_v59 = vrot.slane %v528_v51, 2  ;;  %v536_v60 = vrot.slane %v535_v52, 2  ;;  %v489_v61 = vrot.slane %v488_v53, 1 }
  0x26   : > { %v496_v62 = vrot.slane %v495_v54, 1  ;;  %v503_v63 = vrot.slane %v502_v55, 1  ;;  %v510_v0 = vrot.slane %v509_v56, 1  ;;  %v516_v1 = vadd.f32 %v515_v57, %v514_v49 }
  0x27   : > { %v523_v2 = vadd.f32 %v522_v58, %v521_v50  ;;  %v530_v3 = vadd.f32 %v529_v59, %v528_v51  ;;  %v3313_v4 = vadd.f32 %v536_v60, %v535_v52  ;;  %v2668_v5 = vunpack.c.h.bf16 %v3296_v16 }
  0x28   : > { %v3316_v6 = vadd.f32 %v489_v61, %v488_v53  ;;  %v3318_v7 = vadd.f32 %v496_v62, %v495_v54  ;;  %v3320_v8 = vadd.f32 %v503_v63, %v502_v55  ;;  %v3322_v9 = vadd.f32 %v510_v0, %v509_v56 }
  0x29   : > { %v517_v10 = vrot.slane %v516_v1, 1  ;;  %v524_v11 = vrot.slane %v523_v2, 1  ;;  %v531_v12 = vrot.slane %v530_v3, 1  ;;  %v540_v13 = vsel %vm483_vm0, %v2655_v18, 0.0 }
  0x2a   : > { %v547_v14 = vsel %vm483_vm0, %v2656_v19, 0.0  ;;  %v554_v17 = vsel %vm483_vm0, %v2659_v20, 0.0  ;;  %v561_v25 = vsel %vm483_vm0, %v2660_v21, 0.0  ;;  %v538_v29 = vrot.slane %v3313_v4, 1 }
  0x2b   : > { %v518_v26 = vadd.f32 %v517_v10, %v516_v1  ;;  %v525_v27 = vadd.f32 %v524_v11, %v523_v2  ;;  %v532_v28 = vadd.f32 %v531_v12, %v530_v3  ;;  %v541_v30 = vrot.slane %v540_v13, 4 }
  0x2c   : > { %v548_v31 = vrot.slane %v547_v14, 4  ;;  %v555_v32 = vrot.slane %v554_v17, 4  ;;  %v562_v33 = vrot.slane %v561_v25, 4  ;;  %v568_v34 = vsel %vm483_vm0, %v2663_v22, 0.0 }
  0x2d   : > { %v575_v18 = vsel %vm483_vm0, %v2664_v23, 0.0  ;;  %v582_v19 = vsel %vm483_vm0, %v2667_v24, 0.0  ;;  %v589_v20 = vsel %vm483_vm0, %v2668_v5, 0.0  ;;  %v542_v21 = vadd.f32 %v541_v30, %v540_v13 }
  0x2e   : > { %v549_v35 = vadd.f32 %v548_v31, %v547_v14  ;;  %v556_v36 = vadd.f32 %v555_v32, %v554_v17  ;;  %v563_v37 = vadd.f32 %v562_v33, %v561_v25  ;;  %v569_v38 = vrot.slane %v568_v34, 4 }
  0x2f   : > { %v576_v39 = vrot.slane %v575_v18, 4  ;;  %v583_v40 = vrot.slane %v582_v19, 4  ;;  %v590_v41 = vrot.slane %v589_v20, 4  ;;  %v543_v42 = vrot.slane %v542_v21, 2 }
  0x30   : > { %v550_v22 = vrot.slane %v549_v35, 2  ;;  %v557_v43 = vrot.slane %v556_v36, 2  ;;  %v564_v15 = vrot.slane %v563_v37, 2  ;;  %v570_v44 = vadd.f32 %v569_v38, %v568_v34 }
  0x31   : > { %v577_v23 = vadd.f32 %v576_v39, %v575_v18  ;;  %v584_v45 = vadd.f32 %v583_v40, %v582_v19  ;;  %v591_v16 = vadd.f32 %v590_v41, %v589_v20  ;;  %v544_v46 = vadd.f32 %v543_v42, %v542_v21 }
  0x32   : > { %v551_v24 = vadd.f32 %v550_v22, %v549_v35  ;;  %v558_v47 = vadd.f32 %v557_v43, %v556_v36  ;;  %v565_v48 = vadd.f32 %v564_v15, %v563_v37  ;;  %v571_v49 = vrot.slane %v570_v44, 2 }
  0x33   : > { %v578_v50 = vrot.slane %v577_v23, 2  ;;  %v585_v51 = vrot.slane %v584_v45, 2  ;;  %v592_v52 = vrot.slane %v591_v16, 2  ;;  %v545_v53 = vrot.slane %v544_v46, 1 }
  0x34   : > { %v552_v54 = vrot.slane %v551_v24, 1  ;;  %v559_v55 = vrot.slane %v558_v47, 1  ;;  %v566_v56 = vrot.slane %v565_v48, 1  ;;  %v572_v57 = vadd.f32 %v571_v49, %v570_v44  ;;  %v2900_v49 = vld [vmem:[%s3280_s13 + $0x40] sm:$0xff]  }
  0x35   : > { %v579_v58 = vadd.f32 %v578_v50, %v577_v23  ;;  %v586_v59 = vadd.f32 %v585_v51, %v584_v45  ;;  %v593_v60 = vadd.f32 %v592_v52, %v591_v16  ;;  %v546_v61 = vadd.f32 %v545_v53, %v544_v46 }
  0x36   : > { %v553_v62 = vadd.f32 %v552_v54, %v551_v24  ;;  %v560_v63 = vadd.f32 %v559_v55, %v558_v47  ;;  %v567_v0 = vadd.f32 %v566_v56, %v565_v48  ;;  %v573_v1 = vrot.slane %v572_v57, 1  ;;  %v2901_v54 = vld [vmem:[%s3280_s13 + $0x48] sm:$0xff]  }
  0x37   : > { %v580_v2 = vrot.slane %v579_v58, 1  ;;  %v587_v3 = vrot.slane %v586_v59, 1  ;;  %v594_v5 = vrot.slane %v593_v60, 1  ;;  %v539_v10 = vadd.f32 %v538_v29, %v3313_v4 }
  0x38   : > { %v1380_v11 = vmul.f32 0.125, %v3316_v6  ;;  %v1381_v12 = vmul.f32 0.125, %v3318_v7  ;;  %v1382_v13 = vmul.f32 0.125, %v3320_v8  ;;  %v574_v14 = vadd.f32 %v573_v1, %v572_v57 }
  0x39   : > { %v581_v17 = vadd.f32 %v580_v2, %v579_v58  ;;  %v588_v25 = vadd.f32 %v587_v3, %v586_v59  ;;  %v595_v30 = vadd.f32 %v594_v5, %v593_v60  ;;  %v1383_v31 = vmul.f32 0.125, %v3322_v9  ;;  %v2902_v59 = vld [vmem:[%s3280_s13 + $0x50] sm:$0xff]  }
  0x3a   : > { %v1384_v32 = vmul.f32 0.125, %v518_v26  ;;  %v1385_v33 = vmul.f32 0.125, %v525_v27  ;;  %v1386_v34 = vmul.f32 0.125, %v532_v28  ;;  %v1388_v18 = vmul.f32 0.125, %v546_v61 }
  0x3b   : > { %v1389_v19 = vmul.f32 0.125, %v553_v62  ;;  %v1390_v20 = vmul.f32 0.125, %v560_v63  ;;  %v1391_v4 = vmul.f32 0.125, %v567_v0  ;;  %v1387_v6 = vmul.f32 0.125, %v539_v10  ;;  %v2903_v0 = vld [vmem:[%s3280_s13 + $0x58] sm:$0xff]   ;;  %v3353_v10 = vld [vmem:[%s3280_s13 + $0x60] sm:$0xff]  }
  0x3c   : > { %v1392_v29 = vmul.f32 0.125, %v574_v14  ;;  %v1393_v7 = vmul.f32 0.125, %v581_v17  ;;  %v1394_v21 = vmul.f32 0.125, %v588_v25  ;;  %v1395_v8 = vmul.f32 0.125, %v595_v30  ;;  %v3358_v17 = vld [vmem:[%s3280_s13 + $0x68] sm:$0xff]  }
  0x3d   : > { %v1508_v35 = vpack.c.bf16 %v1380_v11, %v1380_v11  ;;  %v1509_v36 = vpack.c.bf16 %v1381_v12, %v1381_v12  ;;  %v1510_v37 = vpack.c.bf16 %v1382_v13, %v1382_v13  ;;  %v1511_v9 = vpack.c.bf16 %v1383_v31, %v1383_v31 }
  0x3e   : > { %v1512_v26 = vpack.c.bf16 %v1384_v32, %v1384_v32  ;;  %v1513_v27 = vpack.c.bf16 %v1385_v33, %v1385_v33  ;;  %v1514_v28 = vpack.c.bf16 %v1386_v34, %v1386_v34  ;;  %v1516_v38 = vpack.c.bf16 %v1388_v18, %v1388_v18  ;;  %v3363_v33 = vld [vmem:[%s3280_s13 + $0x70] sm:$0xff]  }
  0x3f   : > { %v1517_v39 = vpack.c.bf16 %v1389_v19, %v1389_v19  ;;  %v1518_v40 = vpack.c.bf16 %v1390_v20, %v1390_v20  ;;  %v1519_v41 = vpack.c.bf16 %v1391_v4, %v1391_v4  ;;  %v1515_v42 = vpack.c.bf16 %v1387_v6, %v1387_v6  ;;  %v3369_v4 = vld [vmem:[%s3280_s13 + $0x78] sm:$0xff]  }
  0x40   : > { %v1520_v22 = vpack.c.bf16 %v1392_v29, %v1392_v29  ;;  %v1521_v43 = vpack.c.bf16 %v1393_v7, %v1393_v7  ;;  %v1522_v15 = vpack.c.bf16 %v1394_v21, %v1394_v21  ;;  %v1523_v44 = vpack.c.bf16 %v1395_v8, %v1395_v8 }
  0x41   : > { %v1775_v23 = vunpack.c.l.b16 %v1508_v35  ;;  %v1776_v45 = vunpack.c.l.b16 %v1509_v36  ;;  %v1777_v16 = vunpack.c.l.b16 %v1510_v37  ;;  %v1778_v46 = vunpack.c.l.b16 %v1511_v9 }
  0x42   : > { %v1779_v24 = vunpack.c.l.b16 %v1512_v26  ;;  %v1780_v47 = vunpack.c.l.b16 %v1513_v27  ;;  %v1781_v48 = vunpack.c.l.b16 %v1514_v28  ;;  %v1783_v50 = vunpack.c.l.b16 %v1516_v38 }
  0x43   : > { %v1784_v51 = vunpack.c.l.b16 %v1517_v39  ;;  %v1785_v52 = vunpack.c.l.b16 %v1518_v40  ;;  %v1786_v53 = vunpack.c.l.b16 %v1519_v41  ;;  %v1782_v55 = vunpack.c.l.b16 %v1515_v42 }
  0x44   : > { %v1787_v56 = vunpack.c.l.b16 %v1520_v22  ;;  %v1788_v57 = vunpack.c.l.b16 %v1521_v43  ;;  %v1789_v58 = vunpack.c.l.b16 %v1522_v15  ;;  %v1790_v60 = vunpack.c.l.b16 %v1523_v44 }
  0x45   : > { %v1904_v61 = vsel %vm1903_vm1, %v1776_v45, %v1775_v23  ;;  %v1917_v62 = vsel %vm1903_vm1, %v1784_v51, %v1783_v50  ;;  %v2671_v63 = vunpack.c.l.bf16 %v2900_v49  ;;  %v2672_v3 = vunpack.c.h.bf16 %v2900_v49 }
  0x46   : > { %v1906_v1 = vsel %vm1905_vm2, %v1777_v16, %v1904_v61  ;;  %v1918_v2 = vsel %vm1905_vm2, %v1785_v52, %v1917_v62  ;;  %v2675_v5 = vunpack.c.l.bf16 %v2901_v54  ;;  %v2676_v13 = vunpack.c.h.bf16 %v2901_v54 }
  0x47   : > { %v1908_v11 = vsel %vm1907_vm3, %v1778_v46, %v1906_v1  ;;  %v1919_v12 = vsel %vm1907_vm3, %v1786_v53, %v1918_v2  ;;  %v2679_v14 = vunpack.c.l.bf16 %v2902_v59  ;;  %v2680_v31 = vunpack.c.h.bf16 %v2902_v59 }
  0x48   : > { %v1910_v25 = vsel %vm1909_vm4, %v1779_v24, %v1908_v11  ;;  %v1920_v30 = vsel %vm1909_vm4, %v1787_v56, %v1919_v12  ;;  %v2683_v32 = vunpack.c.l.bf16 %v2903_v0  ;;  %v2684_v19 = vunpack.c.h.bf16 %v2903_v0 }
  0x49   : > { %v1912_v34 = vsel %vm1911_vm5, %v1780_v47, %v1910_v25  ;;  %v1921_v18 = vsel %vm1911_vm5, %v1788_v57, %v1920_v30  ;;  %v2687_v20 = vunpack.c.l.bf16 %v3353_v10  ;;  %v2688_v7 = vunpack.c.h.bf16 %v3353_v10 }
  0x4a   : > { %v1914_v6 = vsel %vm1913_vm6, %v1781_v48, %v1912_v34  ;;  %v1922_v29 = vsel %vm1913_vm6, %v1789_v58, %v1921_v18  ;;  %v2691_v21 = vunpack.c.l.bf16 %v3358_v17  ;;  %v2692_v36 = vunpack.c.h.bf16 %v3358_v17 }
  0x4b   : > { %v1916_v8 = vsel %vm1915_vm7, %v1782_v55, %v1914_v6  ;;  %v1923_v35 = vsel %vm1915_vm7, %v1790_v60, %v1922_v29  ;;  %v2695_v37 = vunpack.c.l.bf16 %v3363_v33  ;;  %v2696_v26 = vunpack.c.h.bf16 %v3363_v33 }
  0x4c   : > { %v2022_v9 = vpack.c.b16 %v1923_v35, %v1916_v8  ;;  %v2699_v27 = vunpack.c.l.bf16 %v3369_v4  ;;  %v596_v28 = vsel %vm483_vm0, %v2671_v63, 0.0  ;;  %v603_v39 = vsel %vm483_vm0, %v2672_v3, 0.0 }
  0x4d   : > { %v597_v38 = vrot.slane %v596_v28, 4  ;;  %v610_v40 = vsel %vm483_vm0, %v2675_v5, 0.0  ;;  %v617_v41 = vsel %vm483_vm0, %v2676_v13, 0.0  ;;  %v604_v42 = vrot.slane %v603_v39, 4 }
  0x4e   : > { %2980 = vmatprep.mubr.msk.bf16.mxu0 %vm483_vm0, %v2022_v9  ;;  %v611_v22 = vrot.slane %v610_v40, 4  ;;  %v618_v43 = vrot.slane %v617_v41, 4  ;;  %v624_v15 = vsel %vm483_vm0, %v2679_v14, 0.0  ;;  %v631_v45 = vsel %vm483_vm0, %v2680_v31, 0.0 }
  0x4f   : > { %v598_v44 = vadd.f32 %v597_v38, %v596_v28  ;;  %v625_v23 = vrot.slane %v624_v15, 4  ;;  %v638_v16 = vsel %vm483_vm0, %v2683_v32, 0.0  ;;  %v605_v46 = vadd.f32 %v604_v42, %v603_v39 }
  0x50   : > { %v612_v24 = vadd.f32 %v611_v22, %v610_v40  ;;  %v619_v47 = vadd.f32 %v618_v43, %v617_v41  ;;  %v632_v48 = vrot.slane %v631_v45, 4  ;;  %v639_v51 = vrot.slane %v638_v16, 4 }
  0x51   : > { %v599_v49 = vrot.slane %v598_v44, 2  ;;  %v626_v50 = vadd.f32 %v625_v23, %v624_v15  ;;  %v645_v52 = vsel %vm483_vm0, %v2684_v19, 0.0  ;;  %v606_v53 = vrot.slane %v605_v46, 2 }
  0x52   : > { %v613_v54 = vrot.slane %v612_v24, 2  ;;  %v620_v55 = vrot.slane %v619_v47, 2  ;;  %v633_v56 = vadd.f32 %v632_v48, %v631_v45  ;;  %v640_v59 = vadd.f32 %v639_v51, %v638_v16 }
  0x53   : > { %v600_v57 = vadd.f32 %v599_v49, %v598_v44  ;;  %v627_v58 = vrot.slane %v626_v50, 2  ;;  %v646_v60 = vrot.slane %v645_v52, 4  ;;  %v607_v61 = vadd.f32 %v606_v53, %v605_v46 }
  0x54   : > { %v614_v62 = vadd.f32 %v613_v54, %v612_v24  ;;  %v621_v63 = vadd.f32 %v620_v55, %v619_v47  ;;  %v634_v0 = vrot.slane %v633_v56, 2  ;;  %v641_v3 = vrot.slane %v640_v59, 2 }
  0x55   : > { %v601_v1 = vrot.slane %v600_v57, 1  ;;  %v628_v2 = vadd.f32 %v627_v58, %v626_v50  ;;  %v647_v5 = vadd.f32 %v646_v60, %v645_v52  ;;  %v608_v11 = vrot.slane %v607_v61, 1 }
  0x56   : > { %v615_v12 = vrot.slane %v614_v62, 1  ;;  %v622_v13 = vrot.slane %v621_v63, 1  ;;  %v635_v14 = vadd.f32 %v634_v0, %v633_v56  ;;  %v2700_v25 = vunpack.c.h.bf16 %v3369_v4 }
  0x57   : > { %v629_v30 = vrot.slane %v628_v2, 1  ;;  %v642_v31 = vadd.f32 %v641_v3, %v640_v59  ;;  %v648_v32 = vrot.slane %v647_v5, 2  ;;  %v602_v34 = vadd.f32 %v601_v1, %v600_v57 }
  0x58   : > { %v609_v18 = vadd.f32 %v608_v11, %v607_v61  ;;  %v3391_v19 = vadd.f32 %v615_v12, %v614_v62  ;;  %v636_v6 = vrot.slane %v635_v14, 1  ;;  %v3393_v29 = vadd.f32 %v622_v13, %v621_v63 }
  0x59   : > { %v643_v8 = vrot.slane %v642_v31, 1  ;;  %v649_v35 = vadd.f32 %v648_v32, %v647_v5  ;;  %v652_v9 = vsel %vm483_vm0, %v2687_v20, 0.0  ;;  %v630_v28 = vadd.f32 %v629_v30, %v628_v2 }
  0x5a   : > { %v653_v38 = vrot.slane %v652_v9, 4  ;;  %v659_v39 = vsel %vm483_vm0, %v2688_v7, 0.0  ;;  %v666_v40 = vsel %vm483_vm0, %v2691_v21, 0.0  ;;  %v637_v41 = vadd.f32 %v636_v6, %v635_v14 }
  0x5b   : > { %v644_v42 = vadd.f32 %v643_v8, %v642_v31  ;;  %v660_v22 = vrot.slane %v659_v39, 4  ;;  %v667_v43 = vrot.slane %v666_v40, 4  ;;  %v673_v44 = vsel %vm483_vm0, %v2692_v36, 0.0 }
  0x5c   : > { %v654_v15 = vadd.f32 %v653_v38, %v652_v9  ;;  %v680_v20 = vsel %vm483_vm0, %v2695_v37, 0.0  ;;  %v687_v10 = vsel %vm483_vm0, %v2696_v26, 0.0  ;;  %v650_v7 = vrot.slane %v649_v35, 1 }
  0x5d   : > { %v661_v23 = vadd.f32 %v660_v22, %v659_v39  ;;  %v668_v21 = vadd.f32 %v667_v43, %v666_v40  ;;  %v674_v45 = vrot.slane %v673_v44, 4  ;;  %v681_v46 = vrot.slane %v680_v20, 4 }
  0x5e   : > { %v655_v16 = vrot.slane %v654_v15, 2  ;;  %v688_v24 = vrot.slane %v687_v10, 4  ;;  %v694_v17 = vsel %vm483_vm0, %v2699_v27, 0.0  ;;  %v701_v26 = vsel %vm483_vm0, %v2700_v25, 0.0 }
  0x5f   : > { %v662_v36 = vrot.slane %v661_v23, 2  ;;  %v669_v47 = vrot.slane %v668_v21, 2  ;;  %v675_v48 = vadd.f32 %v674_v45, %v673_v44  ;;  %v695_v49 = vrot.slane %v694_v17, 4 }
  0x60   : > { %v656_v37 = vadd.f32 %v655_v16, %v654_v15  ;;  %v682_v50 = vadd.f32 %v681_v46, %v680_v20  ;;  %v689_v33 = vadd.f32 %v688_v24, %v687_v10  ;;  %v702_v58 = vrot.slane %v701_v26, 4 }
  0x61   : > { %v663_v51 = vadd.f32 %v662_v36, %v661_v23  ;;  %v670_v52 = vadd.f32 %v669_v47, %v668_v21  ;;  %v676_v53 = vrot.slane %v675_v48, 2  ;;  %v696_v54 = vadd.f32 %v695_v49, %v694_v17 }
  0x62   : > { %v657_v55 = vrot.slane %v656_v37, 1  ;;  %v683_v56 = vrot.slane %v682_v50, 2  ;;  %v690_v57 = vrot.slane %v689_v33, 2  ;;  %v651_v61 = vadd.f32 %v650_v7, %v649_v35 }
  0x63   : > { %v664_v4 = vrot.slane %v663_v51, 1  ;;  %v671_v59 = vrot.slane %v670_v52, 1  ;;  %v677_v27 = vadd.f32 %v676_v53, %v675_v48  ;;  %v697_v60 = vrot.slane %v696_v54, 2 }
  0x64   : > { %v684_v62 = vadd.f32 %v683_v56, %v682_v50  ;;  %v691_v63 = vadd.f32 %v690_v57, %v689_v33  ;;  %v703_v0 = vadd.f32 %v702_v58, %v701_v26  ;;  %v658_v1 = vadd.f32 %v657_v55, %v656_v37 }
  0x65   : > { %v665_v2 = vadd.f32 %v664_v4, %v663_v51  ;;  %v678_v3 = vrot.slane %v677_v27, 1  ;;  %v698_v5 = vadd.f32 %v697_v60, %v696_v54  ;;  %v672_v11 = vadd.f32 %v671_v59, %v670_v52  ;;  %v2908_v4 = vld [vmem:[%s3280_s13 + $0x80] sm:$0xff]  }
  0x66   : > { %v685_v12 = vrot.slane %v684_v62, 1  ;;  %v692_v13 = vrot.slane %v691_v63, 1  ;;  %v704_v14 = vrot.slane %v703_v0, 2  ;;  %v1396_v31 = vmul.f32 0.125, %v602_v34 }
  0x67   : > { %v679_v25 = vadd.f32 %v678_v3, %v677_v27  ;;  %v699_v30 = vrot.slane %v698_v5, 1  ;;  %v1397_v32 = vmul.f32 0.125, %v609_v18  ;;  %v1398_v35 = vmul.f32 0.125, %v3391_v19  ;;  %v2910_v3 = vld [vmem:[%s3280_s13 + $0x90] sm:$0xff]  }
  0x68   : > { %v686_v6 = vadd.f32 %v685_v12, %v684_v62  ;;  %v693_v8 = vadd.f32 %v692_v13, %v691_v63  ;;  %v705_v9 = vadd.f32 %v704_v14, %v703_v0  ;;  %v1399_v39 = vmul.f32 0.125, %v3393_v29  ;;  %v2909_v62 = vld [vmem:[%s3280_s13 + $0x88] sm:$0xff]   ;;  %v2911_v14 = vld [vmem:[%s3280_s13 + $0x98] sm:$0xff]  }
  0x69   : > { %v700_v38 = vadd.f32 %v699_v30, %v698_v5  ;;  %v1400_v40 = vmul.f32 0.125, %v630_v28  ;;  %v1401_v22 = vmul.f32 0.125, %v637_v41  ;;  %v1402_v15 = vmul.f32 0.125, %v644_v42 }
  0x6a   : > { %v706_v43 = vrot.slane %v705_v9, 1  ;;  %v1403_v44 = vmul.f32 0.125, %v651_v61  ;;  %v1404_v20 = vmul.f32 0.125, %v658_v1  ;;  %v1405_v10 = vmul.f32 0.125, %v665_v2 }
  0x6b   : > { %v1406_v7 = vmul.f32 0.125, %v672_v11  ;;  %v1407_v23 = vmul.f32 0.125, %v679_v25  ;;  %v1408_v21 = vmul.f32 0.125, %v686_v6  ;;  %v1409_v18 = vmul.f32 0.125, %v693_v8  ;;  %v3429_v6 = vld [vmem:[%s3280_s13 + $0xa0] sm:$0xff]  }
  0x6c   : > { %v707_v34 = vadd.f32 %v706_v43, %v705_v9  ;;  %v1410_v45 = vmul.f32 0.125, %v700_v38  ;;  %v1524_v16 = vpack.c.bf16 %v1396_v31, %v1396_v31  ;;  %v1525_v46 = vpack.c.bf16 %v1397_v32, %v1397_v32 }
  0x6d   : > { %v1526_v24 = vpack.c.bf16 %v1398_v35, %v1398_v35  ;;  %v1527_v19 = vpack.c.bf16 %v1399_v39, %v1399_v39  ;;  %v1528_v17 = vpack.c.bf16 %v1400_v40, %v1400_v40  ;;  %v1529_v29 = vpack.c.bf16 %v1401_v22, %v1401_v22  ;;  %v3434_v39 = vld [vmem:[%s3280_s13 + $0xa8] sm:$0xff]  }
  0x6e   : > { %v1411_v36 = vmul.f32 0.125, %v707_v34  ;;  %v1530_v28 = vpack.c.bf16 %v1402_v15, %v1402_v15  ;;  %v1532_v41 = vpack.c.bf16 %v1404_v20, %v1404_v20  ;;  %v1531_v47 = vpack.c.bf16 %v1403_v44, %v1403_v44  ;;  %v3439_v44 = vld [vmem:[%s3280_s13 + $0xb0] sm:$0xff]  }
  0x6f   : > { %v1533_v42 = vpack.c.bf16 %v1405_v10, %v1405_v10  ;;  %v1534_v48 = vpack.c.bf16 %v1406_v7, %v1406_v7  ;;  %v1535_v49 = vpack.c.bf16 %v1407_v23, %v1407_v23  ;;  %v1536_v37 = vpack.c.bf16 %v1408_v21, %v1408_v21  ;;  %v3445_v21 = vld [vmem:[%s3280_s13 + $0xb8] sm:$0xff]  }
  0x70   : > { %v1537_v50 = vpack.c.bf16 %v1409_v18, %v1409_v18  ;;  %v1538_v33 = vpack.c.bf16 %v1410_v45, %v1410_v45  ;;  %v1791_v26 = vunpack.c.l.b16 %v1524_v16  ;;  %v1539_v51 = vpack.c.bf16 %v1411_v36, %v1411_v36 }
  0x71   : > { %v1792_v52 = vunpack.c.l.b16 %v1525_v46  ;;  %v1793_v53 = vunpack.c.l.b16 %v1526_v24  ;;  %v1794_v54 = vunpack.c.l.b16 %v1527_v19  ;;  %v1795_v55 = vunpack.c.l.b16 %v1528_v17 }
  0x72   : > { %v1796_v56 = vunpack.c.l.b16 %v1529_v29  ;;  %v1797_v57 = vunpack.c.l.b16 %v1530_v28  ;;  %v1799_v58 = vunpack.c.l.b16 %v1532_v41  ;;  %v1798_v59 = vunpack.c.l.b16 %v1531_v47 }
  0x73   : > { %v1800_v27 = vunpack.c.l.b16 %v1533_v42  ;;  %v1801_v60 = vunpack.c.l.b16 %v1534_v48  ;;  %v1802_v61 = vunpack.c.l.b16 %v1535_v49  ;;  %v1803_v63 = vunpack.c.l.b16 %v1536_v37 }
  0x74   : > { %v1804_v0 = vunpack.c.l.b16 %v1537_v50  ;;  %v1805_v1 = vunpack.c.l.b16 %v1538_v33  ;;  %v1924_v2 = vsel %vm1903_vm1, %v1792_v52, %v1791_v26  ;;  %v1806_v5 = vunpack.c.l.b16 %v1539_v51 }
  0x75   : > { %v1925_v11 = vsel %vm1905_vm2, %v1793_v53, %v1924_v2  ;;  %v1931_v12 = vsel %vm1903_vm1, %v1800_v27, %v1799_v58  ;;  %v2703_v13 = vunpack.c.l.bf16 %v2908_v4  ;;  %v2704_v31 = vunpack.c.h.bf16 %v2908_v4 }
  0x76   : > { %v1926_v25 = vsel %vm1907_vm3, %v1794_v54, %v1925_v11  ;;  %v1932_v30 = vsel %vm1905_vm2, %v1801_v60, %v1931_v12  ;;  %v2707_v32 = vunpack.c.l.bf16 %v2909_v62  ;;  %v2708_v35 = vunpack.c.h.bf16 %v2909_v62 }
  0x77   : > { %v1927_v8 = vsel %vm1909_vm4, %v1795_v55, %v1926_v25  ;;  %v1933_v9 = vsel %vm1907_vm3, %v1802_v61, %v1932_v30  ;;  %v2711_v38 = vunpack.c.l.bf16 %v2910_v3  ;;  %v2712_v43 = vunpack.c.h.bf16 %v2910_v3 }
  0x78   : > { %v1928_v40 = vsel %vm1911_vm5, %v1796_v56, %v1927_v8  ;;  %v1934_v22 = vsel %vm1909_vm4, %v1803_v63, %v1933_v9  ;;  %v2715_v15 = vunpack.c.l.bf16 %v2911_v14  ;;  %v2716_v7 = vunpack.c.h.bf16 %v2911_v14 }
  0x79   : > { %v1929_v20 = vsel %vm1913_vm6, %v1797_v57, %v1928_v40  ;;  %v1935_v10 = vsel %vm1911_vm5, %v1804_v0, %v1934_v22  ;;  %v2719_v23 = vunpack.c.l.bf16 %v3429_v6  ;;  %v2720_v45 = vunpack.c.h.bf16 %v3429_v6 }
  0x7a   : > { %v1930_v34 = vsel %vm1915_vm7, %v1798_v59, %v1929_v20  ;;  %v1936_v18 = vsel %vm1913_vm6, %v1805_v1, %v1935_v10  ;;  %v2723_v16 = vunpack.c.l.bf16 %v3434_v39  ;;  %v2724_v24 = vunpack.c.h.bf16 %v3434_v39 }
  0x7b   : > { %v1937_v46 = vsel %vm1915_vm7, %v1806_v5, %v1936_v18  ;;  %v2727_v19 = vunpack.c.l.bf16 %v3439_v44  ;;  %v2728_v17 = vunpack.c.h.bf16 %v3439_v44  ;;  %v2731_v29 = vunpack.c.l.bf16 %v3445_v21 }
  0x7c   : > { %v2023_v36 = vpack.c.b16 %v1937_v46, %v1930_v34  ;;  %v708_v28 = vsel %vm483_vm0, %v2703_v13, 0.0  ;;  %v715_v41 = vsel %vm483_vm0, %v2704_v31, 0.0  ;;  %v722_v48 = vsel %vm483_vm0, %v2707_v32, 0.0 }
  0x7d   : > { %v709_v47 = vrot.slane %v708_v28, 4  ;;  %v716_v42 = vrot.slane %v715_v41, 4  ;;  %v729_v49 = vsel %vm483_vm0, %v2708_v35, 0.0  ;;  %v723_v37 = vrot.slane %v722_v48, 4 }
  0x7e   : > { %2981 = vmatmul.mubr.msk.bf16.vlgmr.msra.gmra.mrb[0].mxu0 %vm483_vm0, %v2023_v36  ;;  %v730_v50 = vrot.slane %v729_v49, 4  ;;  %v736_v33 = vsel %vm483_vm0, %v2711_v38, 0.0  ;;  %v743_v26 = vsel %vm483_vm0, %v2712_v43, 0.0  ;;  %v750_v57 = vsel %vm483_vm0, %v2715_v15, 0.0 }
  0x7f   : > { %v710_v51 = vadd.f32 %v709_v47, %v708_v28  ;;  %v717_v52 = vadd.f32 %v716_v42, %v715_v41  ;;  %v737_v53 = vrot.slane %v736_v33, 4  ;;  %v744_v54 = vrot.slane %v743_v26, 4 }
  0x80   : > { %v724_v55 = vadd.f32 %v723_v37, %v722_v48  ;;  %v731_v56 = vadd.f32 %v730_v50, %v729_v49  ;;  %v757_v58 = vsel %vm483_vm0, %v2716_v7, 0.0  ;;  %v751_v63 = vrot.slane %v750_v57, 4 }
  0x81   : > { %v711_v4 = vrot.slane %v710_v51, 2  ;;  %v718_v59 = vrot.slane %v717_v52, 2  ;;  %v738_v27 = vadd.f32 %v737_v53, %v736_v33  ;;  %v745_v60 = vadd.f32 %v744_v54, %v743_v26 }
  0x82   : > { %v725_v61 = vrot.slane %v724_v55, 2  ;;  %v732_v62 = vrot.slane %v731_v56, 2  ;;  %v758_v0 = vrot.slane %v757_v58, 4  ;;  %v752_v13 = vadd.f32 %v751_v63, %v750_v57 }
  0x83   : > { %v712_v1 = vadd.f32 %v711_v4, %v710_v51  ;;  %v719_v2 = vadd.f32 %v718_v59, %v717_v52  ;;  %v739_v3 = vrot.slane %v738_v27, 2  ;;  %v746_v5 = vrot.slane %v745_v60, 2 }
  0x84   : > { %v726_v11 = vadd.f32 %v725_v61, %v724_v55  ;;  %v733_v12 = vadd.f32 %v732_v62, %v731_v56  ;;  %v759_v14 = vadd.f32 %v758_v0, %v757_v58  ;;  %v753_v35 = vrot.slane %v752_v13, 2 }
  0x85   : > { %v713_v25 = vrot.slane %v712_v1, 1  ;;  %v720_v30 = vrot.slane %v719_v2, 1  ;;  %v740_v31 = vadd.f32 %v739_v3, %v738_v27  ;;  %v747_v32 = vadd.f32 %v746_v5, %v745_v60 }
  0x86   : > { %v727_v8 = vrot.slane %v726_v11, 1  ;;  %v734_v9 = vrot.slane %v733_v12, 1  ;;  %v760_v38 = vrot.slane %v759_v14, 2  ;;  %v2732_v40 = vunpack.c.h.bf16 %v3445_v21 }
  0x87   : > { %v714_v22 = vadd.f32 %v713_v25, %v712_v1  ;;  %v741_v43 = vrot.slane %v740_v31, 1  ;;  %v748_v15 = vrot.slane %v747_v32, 1  ;;  %v3466_v20 = vadd.f32 %v720_v30, %v719_v2 }
  0x88   : > { %v3468_v10 = vadd.f32 %v727_v8, %v726_v11  ;;  %v754_v7 = vadd.f32 %v753_v35, %v752_v13  ;;  %v761_v34 = vadd.f32 %v760_v38, %v759_v14  ;;  %v3470_v18 = vadd.f32 %v734_v9, %v733_v12 }
  0x89   : > { %v3472_v46 = vadd.f32 %v741_v43, %v740_v31  ;;  %v764_v36 = vsel %vm483_vm0, %v2719_v23, 0.0  ;;  %v771_v28 = vsel %vm483_vm0, %v2720_v45, 0.0  ;;  %v749_v41 = vadd.f32 %v748_v15, %v747_v32 }
  0x8a   : > { %v755_v47 = vrot.slane %v754_v7, 1  ;;  %v765_v42 = vrot.slane %v764_v36, 4  ;;  %v772_v48 = vrot.slane %v771_v28, 4  ;;  %v778_v49 = vsel %vm483_vm0, %v2723_v16, 0.0 }
  0x8b   : > { %v785_v37 = vsel %vm483_vm0, %v2724_v24, 0.0  ;;  %v792_v6 = vsel %vm483_vm0, %v2727_v19, 0.0  ;;  %v799_v23 = vsel %vm483_vm0, %v2728_v17, 0.0  ;;  %v762_v50 = vrot.slane %v761_v34, 1 }
  0x8c   : > { %v756_v45 = vadd.f32 %v755_v47, %v754_v7  ;;  %v766_v33 = vadd.f32 %v765_v42, %v764_v36  ;;  %v773_v26 = vadd.f32 %v772_v48, %v771_v28  ;;  %v779_v51 = vrot.slane %v778_v49, 4 }
  0x8d   : > { %v786_v52 = vrot.slane %v785_v37, 4  ;;  %v793_v53 = vrot.slane %v792_v6, 4  ;;  %v800_v16 = vrot.slane %v799_v23, 4  ;;  %v806_v24 = vsel %vm483_vm0, %v2731_v29, 0.0 }
  0x8e   : > { %v767_v54 = vrot.slane %v766_v33, 2  ;;  %v774_v39 = vrot.slane %v773_v26, 2  ;;  %v813_v19 = vsel %vm483_vm0, %v2732_v40, 0.0  ;;  %v780_v55 = vadd.f32 %v779_v51, %v778_v49 }
  0x8f   : > { %v787_v44 = vadd.f32 %v786_v52, %v785_v37  ;;  %v794_v56 = vadd.f32 %v793_v53, %v792_v6  ;;  %v801_v17 = vadd.f32 %v800_v16, %v799_v23  ;;  %v807_v4 = vrot.slane %v806_v24, 4 }
  0x90   : > { %v768_v57 = vadd.f32 %v767_v54, %v766_v33  ;;  %v775_v58 = vadd.f32 %v774_v39, %v773_v26  ;;  %v814_v59 = vrot.slane %v813_v19, 4  ;;  %v781_v27 = vrot.slane %v780_v55, 2 }
  0x91   : > { %v788_v60 = vrot.slane %v787_v44, 2  ;;  %v795_v61 = vrot.slane %v794_v56, 2  ;;  %v802_v62 = vrot.slane %v801_v17, 2  ;;  %v808_v1 = vadd.f32 %v807_v4, %v806_v24 }
  0x92   : > { %v769_v63 = vrot.slane %v768_v57, 1  ;;  %v776_v0 = vrot.slane %v775_v58, 1  ;;  %v815_v21 = vadd.f32 %v814_v59, %v813_v19  ;;  %v782_v2 = vadd.f32 %v781_v27, %v780_v55 }
  0x93   : > { %v789_v29 = vadd.f32 %v788_v60, %v787_v44  ;;  %v796_v3 = vadd.f32 %v795_v61, %v794_v56  ;;  %v803_v5 = vadd.f32 %v802_v62, %v801_v17  ;;  %v763_v11 = vadd.f32 %v762_v50, %v761_v34 }
  0x94   : > { %v770_v12 = vadd.f32 %v769_v63, %v768_v57  ;;  %v809_v13 = vrot.slane %v808_v1, 2  ;;  %v816_v14 = vrot.slane %v815_v21, 2  ;;  %v783_v25 = vrot.slane %v782_v2, 1 }
  0x95   : > { %v790_v30 = vrot.slane %v789_v29, 1  ;;  %v797_v31 = vrot.slane %v796_v3, 1  ;;  %v804_v32 = vrot.slane %v803_v5, 1  ;;  %v777_v8 = vadd.f32 %v776_v0, %v775_v58 }
  0x96   : > { %v810_v9 = vadd.f32 %v809_v13, %v808_v1  ;;  %v817_v35 = vadd.f32 %v816_v14, %v815_v21  ;;  %v1412_v38 = vmul.f32 0.125, %v714_v22  ;;  %v784_v40 = vadd.f32 %v783_v25, %v782_v2  ;;  %v2916_v2 = vld [vmem:[%s3280_s13 + $0xc0] sm:$0xff]  }
  0x97   : > { %v791_v43 = vadd.f32 %v790_v30, %v789_v29  ;;  %v798_v15 = vadd.f32 %v797_v31, %v796_v3  ;;  %v1413_v7 = vmul.f32 0.125, %v3466_v20  ;;  %v805_v36 = vadd.f32 %v804_v32, %v803_v5  ;;  %v2918_v31 = vld [vmem:[%s3280_s13 + $0xd0] sm:$0xff]  }
  0x98   : > { %v811_v28 = vrot.slane %v810_v9, 1  ;;  %v818_v47 = vrot.slane %v817_v35, 1  ;;  %v1414_v34 = vmul.f32 0.125, %v3468_v10  ;;  %v1415_v42 = vmul.f32 0.125, %v3470_v18 }
  0x99   : > { %v1416_v48 = vmul.f32 0.125, %v3472_v46  ;;  %v1417_v49 = vmul.f32 0.125, %v749_v41  ;;  %v1418_v37 = vmul.f32 0.125, %v756_v45  ;;  %v1420_v50 = vmul.f32 0.125, %v770_v12  ;;  %v2917_v12 = vld [vmem:[%s3280_s13 + $0xc8] sm:$0xff]  }
  0x9a   : > { %v812_v6 = vadd.f32 %v811_v28, %v810_v9  ;;  %v819_v23 = vadd.f32 %v818_v47, %v817_v35  ;;  %v1421_v22 = vmul.f32 0.125, %v777_v8  ;;  %v1419_v33 = vmul.f32 0.125, %v763_v11 }
  0x9b   : > { %v1422_v26 = vmul.f32 0.125, %v784_v40  ;;  %v1423_v51 = vmul.f32 0.125, %v791_v43  ;;  %v1424_v52 = vmul.f32 0.125, %v798_v15  ;;  %v1425_v20 = vmul.f32 0.125, %v805_v36  ;;  %v3509_v36 = vld [vmem:[%s3280_s13 + $0xe0] sm:$0xff]  }
  0x9c   : > { %v1426_v53 = vmul.f32 0.125, %v812_v6  ;;  %v1540_v16 = vpack.c.bf16 %v1412_v38, %v1412_v38  ;;  %v1541_v54 = vpack.c.bf16 %v1413_v7, %v1413_v7  ;;  %v1427_v39 = vmul.f32 0.125, %v819_v23  ;;  %v2919_v38 = vld [vmem:[%s3280_s13 + $0xd8] sm:$0xff]  }
  0x9d   : > { %v1542_v10 = vpack.c.bf16 %v1414_v34, %v1414_v34  ;;  %v1543_v24 = vpack.c.bf16 %v1415_v42, %v1415_v42  ;;  %v1544_v18 = vpack.c.bf16 %v1416_v48, %v1416_v48  ;;  %v1545_v19 = vpack.c.bf16 %v1417_v49, %v1417_v49  ;;  %v3514_v48 = vld [vmem:[%s3280_s13 + $0xe8] sm:$0xff]  }
  0x9e   : > { %v1546_v46 = vpack.c.bf16 %v1418_v37, %v1418_v37  ;;  %v1548_v41 = vpack.c.bf16 %v1420_v50, %v1420_v50  ;;  %v1549_v45 = vpack.c.bf16 %v1421_v22, %v1421_v22  ;;  %v1547_v55 = vpack.c.bf16 %v1419_v33, %v1419_v33  ;;  %v3519_v50 = vld [vmem:[%s3280_s13 + $0xf0] sm:$0xff]  }
  0x9f   : > { %v1550_v44 = vpack.c.bf16 %v1422_v26, %v1422_v26  ;;  %v1551_v56 = vpack.c.bf16 %v1423_v51, %v1423_v51  ;;  %v1552_v17 = vpack.c.bf16 %v1424_v52, %v1424_v52  ;;  %v1553_v57 = vpack.c.bf16 %v1425_v20, %v1425_v20  ;;  %v3525_v52 = vld [vmem:[%s3280_s13 + $0xf8] sm:$0xff]  }
  0xa0   : > { %v1554_v58 = vpack.c.bf16 %v1426_v53, %v1426_v53  ;;  %v1807_v4 = vunpack.c.l.b16 %v1540_v16  ;;  %v1808_v59 = vunpack.c.l.b16 %v1541_v54  ;;  %v1555_v27 = vpack.c.bf16 %v1427_v39, %v1427_v39 }
  0xa1   : > { %v1809_v60 = vunpack.c.l.b16 %v1542_v10  ;;  %v1810_v61 = vunpack.c.l.b16 %v1543_v24  ;;  %v1811_v62 = vunpack.c.l.b16 %v1544_v18  ;;  %v1812_v63 = vunpack.c.l.b16 %v1545_v19 }
  0xa2   : > { %v1813_v0 = vunpack.c.l.b16 %v1546_v46  ;;  %v1815_v1 = vunpack.c.l.b16 %v1548_v41  ;;  %v1816_v21 = vunpack.c.l.b16 %v1549_v45  ;;  %v1814_v29 = vunpack.c.l.b16 %v1547_v55 }
  0xa3   : > { %v1817_v3 = vunpack.c.l.b16 %v1550_v44  ;;  %v1818_v5 = vunpack.c.l.b16 %v1551_v56  ;;  %v1819_v11 = vunpack.c.l.b16 %v1552_v17  ;;  %v1820_v13 = vunpack.c.l.b16 %v1553_v57 }
  0xa4   : > { %v1821_v14 = vunpack.c.l.b16 %v1554_v58  ;;  %v1938_v25 = vsel %vm1903_vm1, %v1808_v59, %v1807_v4  ;;  %v1945_v30 = vsel %vm1903_vm1, %v1816_v21, %v1815_v1  ;;  %v1822_v32 = vunpack.c.l.b16 %v1555_v27 }
  0xa5   : > { %v1939_v8 = vsel %vm1905_vm2, %v1809_v60, %v1938_v25  ;;  %v1946_v9 = vsel %vm1905_vm2, %v1817_v3, %v1945_v30  ;;  %v2735_v35 = vunpack.c.l.bf16 %v2916_v2  ;;  %v2736_v15 = vunpack.c.h.bf16 %v2916_v2 }
  0xa6   : > { %v1940_v40 = vsel %vm1907_vm3, %v1810_v61, %v1939_v8  ;;  %v1947_v43 = vsel %vm1907_vm3, %v1818_v5, %v1946_v9  ;;  %v2739_v7 = vunpack.c.l.bf16 %v2917_v12  ;;  %v2740_v34 = vunpack.c.h.bf16 %v2917_v12 }
  0xa7   : > { %v1941_v28 = vsel %vm1909_vm4, %v1811_v62, %v1940_v40  ;;  %v1948_v47 = vsel %vm1909_vm4, %v1819_v11, %v1947_v43  ;;  %v2743_v42 = vunpack.c.l.bf16 %v2918_v31  ;;  %v2744_v6 = vunpack.c.h.bf16 %v2918_v31 }
  0xa8   : > { %v1942_v49 = vsel %vm1911_vm5, %v1812_v63, %v1941_v28  ;;  %v1949_v37 = vsel %vm1911_vm5, %v1820_v13, %v1948_v47  ;;  %v2747_v23 = vunpack.c.l.bf16 %v2919_v38  ;;  %v2748_v26 = vunpack.c.h.bf16 %v2919_v38 }
  0xa9   : > { %v1943_v22 = vsel %vm1913_vm6, %v1813_v0, %v1942_v49  ;;  %v1950_v33 = vsel %vm1913_vm6, %v1821_v14, %v1949_v37  ;;  %v2751_v51 = vunpack.c.l.bf16 %v3509_v36  ;;  %v2752_v16 = vunpack.c.h.bf16 %v3509_v36 }
  0xaa   : > { %v1944_v20 = vsel %vm1915_vm7, %v1814_v29, %v1943_v22  ;;  %v1951_v53 = vsel %vm1915_vm7, %v1822_v32, %v1950_v33  ;;  %v2755_v54 = vunpack.c.l.bf16 %v3514_v48  ;;  %v2756_v10 = vunpack.c.h.bf16 %v3514_v48 }
  0xab   : > { %v2024_v39 = vpack.c.b16 %v1951_v53, %v1944_v20  ;;  %v2759_v24 = vunpack.c.l.bf16 %v3519_v50  ;;  %v2760_v18 = vunpack.c.h.bf16 %v3519_v50  ;;  %v2763_v19 = vunpack.c.l.bf16 %v3525_v52 }
  0xac   : > { %v820_v46 = vsel %vm483_vm0, %v2735_v35, 0.0  ;;  %v827_v41 = vsel %vm483_vm0, %v2736_v15, 0.0  ;;  %v834_v45 = vsel %vm483_vm0, %v2739_v7, 0.0  ;;  %v841_v17 = vsel %vm483_vm0, %v2740_v34, 0.0 }
  0xad   : > { %2984 = vmatprep.mubr.msk.bf16.mxu0 %vm483_vm0, %v2024_v39  ;;  %v821_v55 = vrot.slane %v820_v46, 4  ;;  %v828_v44 = vrot.slane %v827_v41, 4  ;;  %v835_v56 = vrot.slane %v834_v45, 4  ;;  %v842_v57 = vrot.slane %v841_v17, 4 }
  0xae   : > { %v848_v58 = vsel %vm483_vm0, %v2743_v42, 0.0  ;;  %v855_v4 = vsel %vm483_vm0, %v2744_v6, 0.0  ;;  %v862_v59 = vsel %vm483_vm0, %v2747_v23, 0.0  ;;  %v869_v21 = vsel %vm483_vm0, %v2748_v26, 0.0 }
  0xaf   : > { %v822_v27 = vadd.f32 %v821_v55, %v820_v46  ;;  %v829_v60 = vadd.f32 %v828_v44, %v827_v41  ;;  %v836_v61 = vadd.f32 %v835_v56, %v834_v45  ;;  %v849_v62 = vrot.slane %v848_v58, 4 }
  0xb0   : > { %v843_v63 = vadd.f32 %v842_v57, %v841_v17  ;;  %v856_v0 = vrot.slane %v855_v4, 4  ;;  %v863_v1 = vrot.slane %v862_v59, 4  ;;  %v870_v14 = vrot.slane %v869_v21, 4 }
  0xb1   : > { %v823_v2 = vrot.slane %v822_v27, 2  ;;  %v830_v29 = vrot.slane %v829_v60, 2  ;;  %v837_v3 = vrot.slane %v836_v61, 2  ;;  %v850_v5 = vadd.f32 %v849_v62, %v848_v58 }
  0xb2   : > { %v844_v11 = vrot.slane %v843_v63, 2  ;;  %v857_v12 = vadd.f32 %v856_v0, %v855_v4  ;;  %v864_v13 = vadd.f32 %v863_v1, %v862_v59  ;;  %v871_v38 = vadd.f32 %v870_v14, %v869_v21 }
  0xb3   : > { %v824_v25 = vadd.f32 %v823_v2, %v822_v27  ;;  %v831_v30 = vadd.f32 %v830_v29, %v829_v60  ;;  %v838_v31 = vadd.f32 %v837_v3, %v836_v61  ;;  %v851_v32 = vrot.slane %v850_v5, 2 }
  0xb4   : > { %v845_v8 = vadd.f32 %v844_v11, %v843_v63  ;;  %v858_v9 = vrot.slane %v857_v12, 2  ;;  %v865_v35 = vrot.slane %v864_v13, 2  ;;  %v872_v42 = vrot.slane %v871_v38, 2 }
  0xb5   : > { %v825_v40 = vrot.slane %v824_v25, 1  ;;  %v832_v43 = vrot.slane %v831_v30, 1  ;;  %v839_v15 = vrot.slane %v838_v31, 1  ;;  %v852_v7 = vadd.f32 %v851_v32, %v850_v5 }
  0xb6   : > { %v846_v28 = vrot.slane %v845_v8, 1  ;;  %v859_v47 = vadd.f32 %v858_v9, %v857_v12  ;;  %v866_v34 = vadd.f32 %v865_v35, %v864_v13  ;;  %v2764_v49 = vunpack.c.h.bf16 %v3525_v52 }
  0xb7   : > { %v3545_v37 = vadd.f32 %v825_v40, %v824_v25  ;;  %v3547_v6 = vadd.f32 %v832_v43, %v831_v30  ;;  %v853_v23 = vrot.slane %v852_v7, 1  ;;  %v3549_v22 = vadd.f32 %v839_v15, %v838_v31 }
  0xb8   : > { %v860_v33 = vrot.slane %v859_v47, 1  ;;  %v867_v26 = vrot.slane %v866_v34, 1  ;;  %v873_v20 = vadd.f32 %v872_v42, %v871_v38  ;;  %v847_v53 = vadd.f32 %v846_v28, %v845_v8 }
  0xb9   : > { %v876_v39 = vsel %vm483_vm0, %v2751_v51, 0.0  ;;  %v883_v46 = vsel %vm483_vm0, %v2752_v16, 0.0  ;;  %v890_v41 = vsel %vm483_vm0, %v2755_v54, 0.0  ;;  %v854_v45 = vadd.f32 %v853_v23, %v852_v7 }
  0xba   : > { %v861_v55 = vadd.f32 %v860_v33, %v859_v47  ;;  %v868_v44 = vadd.f32 %v867_v26, %v866_v34  ;;  %v877_v56 = vrot.slane %v876_v39, 4  ;;  %v884_v17 = vrot.slane %v883_v46, 4 }
  0xbb   : > { %v891_v57 = vrot.slane %v890_v41, 4  ;;  %v897_v58 = vsel %vm483_vm0, %v2756_v10, 0.0  ;;  %v904_v36 = vsel %vm483_vm0, %v2759_v24, 0.0  ;;  %v874_v4 = vrot.slane %v873_v20, 1 }
  0xbc   : > { %v878_v51 = vadd.f32 %v877_v56, %v876_v39  ;;  %v898_v59 = vrot.slane %v897_v58, 4  ;;  %v905_v16 = vrot.slane %v904_v36, 4  ;;  %v885_v27 = vadd.f32 %v884_v17, %v883_v46 }
  0xbd   : > { %v892_v54 = vadd.f32 %v891_v57, %v890_v41  ;;  %v911_v60 = vsel %vm483_vm0, %v2760_v18, 0.0  ;;  %v918_v48 = vsel %vm483_vm0, %v2763_v19, 0.0  ;;  %v925_v21 = vsel %vm483_vm0, %v2764_v49, 0.0 }
  0xbe   : > { %v879_v61 = vrot.slane %v878_v51, 2  ;;  %v899_v10 = vadd.f32 %v898_v59, %v897_v58  ;;  %v906_v62 = vadd.f32 %v905_v16, %v904_v36  ;;  %v912_v63 = vrot.slane %v911_v60, 4 }
  0xbf   : > { %v886_v0 = vrot.slane %v885_v27, 2  ;;  %v893_v24 = vrot.slane %v892_v54, 2  ;;  %v919_v1 = vrot.slane %v918_v48, 4  ;;  %v926_v12 = vrot.slane %v925_v21, 4 }
  0xc0   : > { %v880_v2 = vadd.f32 %v879_v61, %v878_v51  ;;  %v900_v29 = vrot.slane %v899_v10, 2  ;;  %v907_v3 = vrot.slane %v906_v62, 2  ;;  %v913_v5 = vadd.f32 %v912_v63, %v911_v60 }
  0xc1   : > { %v887_v50 = vadd.f32 %v886_v0, %v885_v27  ;;  %v894_v11 = vadd.f32 %v893_v24, %v892_v54  ;;  %v920_v18 = vadd.f32 %v919_v1, %v918_v48  ;;  %v927_v32 = vadd.f32 %v926_v12, %v925_v21 }
  0xc2   : > { %v881_v52 = vrot.slane %v880_v2, 1  ;;  %v901_v13 = vadd.f32 %v900_v29, %v899_v10  ;;  %v908_v19 = vadd.f32 %v907_v3, %v906_v62  ;;  %v914_v14 = vrot.slane %v913_v5, 2 }
  0xc3   : > { %v888_v25 = vrot.slane %v887_v50, 1  ;;  %v895_v30 = vrot.slane %v894_v11, 1  ;;  %v921_v31 = vrot.slane %v920_v18, 2  ;;  %v875_v8 = vadd.f32 %v874_v4, %v873_v20 }
  0xc4   : > { %v902_v9 = vrot.slane %v901_v13, 1  ;;  %v909_v35 = vrot.slane %v908_v19, 1  ;;  %v915_v38 = vadd.f32 %v914_v14, %v913_v5  ;;  %v882_v40 = vadd.f32 %v881_v52, %v880_v2 }
  0xc5   : > { %v889_v43 = vadd.f32 %v888_v25, %v887_v50  ;;  %v922_v15 = vadd.f32 %v921_v31, %v920_v18  ;;  %v928_v7 = vrot.slane %v927_v32, 2  ;;  %v896_v28 = vadd.f32 %v895_v30, %v894_v11  ;;  %v2924_v25 = vld [vmem:[%s3280_s13 + $0x100] sm:$0xff]  }
  0xc6   : > { %v903_v47 = vadd.f32 %v902_v9, %v901_v13  ;;  %v910_v34 = vadd.f32 %v909_v35, %v908_v19  ;;  %v916_v42 = vrot.slane %v915_v38, 1  ;;  %v1428_v33 = vmul.f32 0.125, %v3545_v37  ;;  %v2925_v9 = vld [vmem:[%s3280_s13 + $0x108] sm:$0xff]  }
  0xc7   : > { %v923_v49 = vrot.slane %v922_v15, 1  ;;  %v929_v23 = vadd.f32 %v928_v7, %v927_v32  ;;  %v1429_v26 = vmul.f32 0.125, %v3547_v6  ;;  %v1430_v20 = vmul.f32 0.125, %v3549_v22 }
  0xc8   : > { %v917_v39 = vadd.f32 %v916_v42, %v915_v38  ;;  %v1431_v46 = vmul.f32 0.125, %v847_v53  ;;  %v1432_v41 = vmul.f32 0.125, %v854_v45  ;;  %v1433_v57 = vmul.f32 0.125, %v861_v55  ;;  %v2927_v42 = vld [vmem:[%s3280_s13 + $0x118] sm:$0xff]  }
  0xc9   : > { %v924_v56 = vadd.f32 %v923_v49, %v922_v15  ;;  %v930_v17 = vrot.slane %v929_v23, 1  ;;  %v1434_v58 = vmul.f32 0.125, %v868_v44  ;;  %v1435_v36 = vmul.f32 0.125, %v875_v8  ;;  %v2926_v15 = vld [vmem:[%s3280_s13 + $0x110] sm:$0xff]  }
  0xca   : > { %v1436_v4 = vmul.f32 0.125, %v882_v40  ;;  %v1437_v51 = vmul.f32 0.125, %v889_v43  ;;  %v1438_v59 = vmul.f32 0.125, %v896_v28  ;;  %v1439_v27 = vmul.f32 0.125, %v903_v47 }
  0xcb   : > { %v931_v16 = vadd.f32 %v930_v17, %v929_v23  ;;  %v1440_v54 = vmul.f32 0.125, %v910_v34  ;;  %v1441_v60 = vmul.f32 0.125, %v917_v39  ;;  %v1442_v37 = vmul.f32 0.125, %v924_v56  ;;  %v3583_v39 = vld [vmem:[%s3280_s13 + $0x120] sm:$0xff]   ;;  %v3588_v17 = vld [vmem:[%s3280_s13 + $0x128] sm:$0xff]  }
  0xcc   : > { %v1556_v48 = vpack.c.bf16 %v1428_v33, %v1428_v33  ;;  %v1557_v6 = vpack.c.bf16 %v1429_v26, %v1429_v26  ;;  %v1558_v61 = vpack.c.bf16 %v1430_v20, %v1430_v20  ;;  %v1559_v22 = vpack.c.bf16 %v1431_v46, %v1431_v46 }
  0xcd   : > { %v1443_v10 = vmul.f32 0.125, %v931_v16  ;;  %v1560_v53 = vpack.c.bf16 %v1432_v41, %v1432_v41  ;;  %v1561_v45 = vpack.c.bf16 %v1433_v57, %v1433_v57  ;;  %v1562_v62 = vpack.c.bf16 %v1434_v58, %v1434_v58 }
  0xce   : > { %v1564_v63 = vpack.c.bf16 %v1436_v4, %v1436_v4  ;;  %v1565_v55 = vpack.c.bf16 %v1437_v51, %v1437_v51  ;;  %v1566_v44 = vpack.c.bf16 %v1438_v59, %v1438_v59  ;;  %v1563_v0 = vpack.c.bf16 %v1435_v36, %v1435_v36  ;;  %v3593_v51 = vld [vmem:[%s3280_s13 + $0x130] sm:$0xff]   ;;  %v3596_v59 = vld [vmem:[%s3280_s13 + $0x138] sm:$0xff]  }
  0xcf   : > { %v1567_v24 = vpack.c.bf16 %v1439_v27, %v1439_v27  ;;  %v1568_v1 = vpack.c.bf16 %v1440_v54, %v1440_v54  ;;  %v1569_v21 = vpack.c.bf16 %v1441_v60, %v1441_v60  ;;  %v1570_v2 = vpack.c.bf16 %v1442_v37, %v1442_v37 }
  0xd0   : > { %v1571_v29 = vpack.c.bf16 %v1443_v10, %v1443_v10  ;;  %v1823_v3 = vunpack.c.l.b16 %v1556_v48  ;;  %v1824_v5 = vunpack.c.l.b16 %v1557_v6  ;;  %v1825_v50 = vunpack.c.l.b16 %v1558_v61 }
  0xd1   : > { %v1826_v11 = vunpack.c.l.b16 %v1559_v22  ;;  %v1827_v18 = vunpack.c.l.b16 %v1560_v53  ;;  %v1828_v12 = vunpack.c.l.b16 %v1561_v45  ;;  %v1829_v52 = vunpack.c.l.b16 %v1562_v62 }
  0xd2   : > { %v1831_v13 = vunpack.c.l.b16 %v1564_v63  ;;  %v1832_v19 = vunpack.c.l.b16 %v1565_v55  ;;  %v1833_v14 = vunpack.c.l.b16 %v1566_v44  ;;  %v1830_v30 = vunpack.c.l.b16 %v1563_v0 }
  0xd3   : > { %v1834_v31 = vunpack.c.l.b16 %v1567_v24  ;;  %v1835_v32 = vunpack.c.l.b16 %v1568_v1  ;;  %v1836_v8 = vunpack.c.l.b16 %v1569_v21  ;;  %v1837_v35 = vunpack.c.l.b16 %v1570_v2 }
  0xd4   : > { %v1838_v38 = vunpack.c.l.b16 %v1571_v29  ;;  %v1952_v40 = vsel %vm1903_vm1, %v1824_v5, %v1823_v3  ;;  %v1959_v43 = vsel %vm1903_vm1, %v1832_v19, %v1831_v13  ;;  %v2767_v47 = vunpack.c.l.bf16 %v2924_v25 }
  0xd5   : > { %v1953_v7 = vsel %vm1905_vm2, %v1825_v50, %v1952_v40  ;;  %v1960_v28 = vsel %vm1905_vm2, %v1833_v14, %v1959_v43  ;;  %v2768_v34 = vunpack.c.h.bf16 %v2924_v25  ;;  %v2771_v33 = vunpack.c.l.bf16 %v2925_v9 }
  0xd6   : > { %v1954_v49 = vsel %vm1907_vm3, %v1826_v11, %v1953_v7  ;;  %v1961_v23 = vsel %vm1907_vm3, %v1834_v31, %v1960_v28  ;;  %v2772_v26 = vunpack.c.h.bf16 %v2925_v9  ;;  %v2775_v41 = vunpack.c.l.bf16 %v2926_v15 }
  0xd7   : > { %v1955_v20 = vsel %vm1909_vm4, %v1827_v18, %v1954_v49  ;;  %v1962_v46 = vsel %vm1909_vm4, %v1835_v32, %v1961_v23  ;;  %v2776_v56 = vunpack.c.h.bf16 %v2926_v15  ;;  %v2779_v36 = vunpack.c.l.bf16 %v2927_v42 }
  0xd8   : > { %v1956_v57 = vsel %vm1911_vm5, %v1828_v12, %v1955_v20  ;;  %v1963_v58 = vsel %vm1911_vm5, %v1836_v8, %v1962_v46  ;;  %v2780_v4 = vunpack.c.h.bf16 %v2927_v42  ;;  %v2783_v54 = vunpack.c.l.bf16 %v3583_v39 }
  0xd9   : > { %v1957_v16 = vsel %vm1913_vm6, %v1829_v52, %v1956_v57  ;;  %v1964_v27 = vsel %vm1913_vm6, %v1837_v35, %v1963_v58  ;;  %v2784_v60 = vunpack.c.h.bf16 %v3583_v39  ;;  %v2787_v6 = vunpack.c.l.bf16 %v3588_v17 }
  0xda   : > { %v1958_v37 = vsel %vm1915_vm7, %v1830_v30, %v1957_v16  ;;  %v1965_v48 = vsel %vm1915_vm7, %v1838_v38, %v1964_v27  ;;  %v2788_v61 = vunpack.c.h.bf16 %v3588_v17  ;;  %v2791_v22 = vunpack.c.l.bf16 %v3593_v51 }
  0xdb   : > { %v2025_v10 = vpack.c.b16 %v1965_v48, %v1958_v37  ;;  %v2792_v53 = vunpack.c.h.bf16 %v3593_v51  ;;  %v2795_v45 = vunpack.c.l.bf16 %v3596_v59  ;;  %v932_v62 = vsel %vm483_vm0, %v2767_v47, 0.0 }
  0xdc   : > { %v939_v63 = vsel %vm483_vm0, %v2768_v34, 0.0  ;;  %v946_v55 = vsel %vm483_vm0, %v2771_v33, 0.0  ;;  %v953_v44 = vsel %vm483_vm0, %v2772_v26, 0.0  ;;  %v933_v0 = vrot.slane %v932_v62, 4 }
  0xdd   : > { %2985 = vmatmul.mubr.msk.bf16.gmra.mrb[4].mxu0 %vm483_vm0, %v2025_v10  ;;  %v940_v24 = vrot.slane %v939_v63, 4  ;;  %v947_v1 = vrot.slane %v946_v55, 4  ;;  %v954_v21 = vrot.slane %v953_v44, 4  ;;  %v960_v2 = vsel %vm483_vm0, %v2775_v41, 0.0 }
  0xde   : > { %v967_v29 = vsel %vm483_vm0, %v2776_v56, 0.0  ;;  %v974_v3 = vsel %vm483_vm0, %v2779_v36, 0.0  ;;  %v981_v5 = vsel %vm483_vm0, %v2780_v4, 0.0  ;;  %v934_v50 = vadd.f32 %v933_v0, %v932_v62 }
  0xdf   : > { %v941_v11 = vadd.f32 %v940_v24, %v939_v63  ;;  %v948_v18 = vadd.f32 %v947_v1, %v946_v55  ;;  %v955_v12 = vadd.f32 %v954_v21, %v953_v44  ;;  %v961_v52 = vrot.slane %v960_v2, 4 }
  0xe0   : > { %v968_v13 = vrot.slane %v967_v29, 4  ;;  %v975_v19 = vrot.slane %v974_v3, 4  ;;  %v982_v14 = vrot.slane %v981_v5, 4  ;;  %v935_v25 = vrot.slane %v934_v50, 2 }
  0xe1   : > { %v942_v30 = vrot.slane %v941_v11, 2  ;;  %v949_v31 = vrot.slane %v948_v18, 2  ;;  %v956_v32 = vrot.slane %v955_v12, 2  ;;  %v962_v8 = vadd.f32 %v961_v52, %v960_v2 }
  0xe2   : > { %v969_v9 = vadd.f32 %v968_v13, %v967_v29  ;;  %v976_v35 = vadd.f32 %v975_v19, %v974_v3  ;;  %v983_v38 = vadd.f32 %v982_v14, %v981_v5  ;;  %v936_v40 = vadd.f32 %v935_v25, %v934_v50 }
  0xe3   : > { %v943_v43 = vadd.f32 %v942_v30, %v941_v11  ;;  %v950_v15 = vadd.f32 %v949_v31, %v948_v18  ;;  %v957_v7 = vadd.f32 %v956_v32, %v955_v12  ;;  %v963_v28 = vrot.slane %v962_v8, 2 }
  0xe4   : > { %v970_v47 = vrot.slane %v969_v9, 2  ;;  %v977_v34 = vrot.slane %v976_v35, 2  ;;  %v984_v42 = vrot.slane %v983_v38, 2  ;;  %v937_v49 = vrot.slane %v936_v40, 1 }
  0xe5   : > { %v944_v23 = vrot.slane %v943_v43, 1  ;;  %v951_v33 = vrot.slane %v950_v15, 1  ;;  %v958_v26 = vrot.slane %v957_v7, 1  ;;  %v964_v20 = vadd.f32 %v963_v28, %v962_v8 }
  0xe6   : > { %v971_v46 = vadd.f32 %v970_v47, %v969_v9  ;;  %v978_v41 = vadd.f32 %v977_v34, %v976_v35  ;;  %v3618_v56 = vadd.f32 %v984_v42, %v983_v38  ;;  %v2796_v17 = vunpack.c.h.bf16 %v3596_v59 }
  0xe7   : > { %v3621_v57 = vadd.f32 %v937_v49, %v936_v40  ;;  %v3623_v58 = vadd.f32 %v944_v23, %v943_v43  ;;  %v3625_v36 = vadd.f32 %v951_v33, %v950_v15  ;;  %v3627_v4 = vadd.f32 %v958_v26, %v957_v7 }
  0xe8   : > { %v965_v16 = vrot.slane %v964_v20, 1  ;;  %v972_v27 = vrot.slane %v971_v46, 1  ;;  %v979_v37 = vrot.slane %v978_v41, 1  ;;  %v988_v48 = vsel %vm483_vm0, %v2783_v54, 0.0 }
  0xe9   : > { %v995_v10 = vsel %vm483_vm0, %v2784_v60, 0.0  ;;  %v1002_v62 = vsel %vm483_vm0, %v2787_v6, 0.0  ;;  %v1009_v63 = vsel %vm483_vm0, %v2788_v61, 0.0  ;;  %v986_v24 = vrot.slane %v3618_v56, 1 }
  0xea   : > { %v966_v55 = vadd.f32 %v965_v16, %v964_v20  ;;  %v973_v44 = vadd.f32 %v972_v27, %v971_v46  ;;  %v980_v0 = vadd.f32 %v979_v37, %v978_v41  ;;  %v989_v1 = vrot.slane %v988_v48, 4 }
  0xeb   : > { %v996_v21 = vrot.slane %v995_v10, 4  ;;  %v1003_v2 = vrot.slane %v1002_v62, 4  ;;  %v1010_v29 = vrot.slane %v1009_v63, 4  ;;  %v1016_v54 = vsel %vm483_vm0, %v2791_v22, 0.0 }
  0xec   : > { %v1023_v39 = vsel %vm483_vm0, %v2792_v53, 0.0  ;;  %v1030_v60 = vsel %vm483_vm0, %v2795_v45, 0.0  ;;  %v1037_v6 = vsel %vm483_vm0, %v2796_v17, 0.0  ;;  %v990_v61 = vadd.f32 %v989_v1, %v988_v48 }
  0xed   : > { %v997_v3 = vadd.f32 %v996_v21, %v995_v10  ;;  %v1004_v5 = vadd.f32 %v1003_v2, %v1002_v62  ;;  %v1011_v50 = vadd.f32 %v1010_v29, %v1009_v63  ;;  %v1017_v11 = vrot.slane %v1016_v54, 4 }
  0xee   : > { %v1024_v18 = vrot.slane %v1023_v39, 4  ;;  %v1031_v12 = vrot.slane %v1030_v60, 4  ;;  %v1038_v52 = vrot.slane %v1037_v6, 4  ;;  %v991_v13 = vrot.slane %v990_v61, 2 }
  0xef   : > { %v998_v22 = vrot.slane %v997_v3, 2  ;;  %v1005_v19 = vrot.slane %v1004_v5, 2  ;;  %v1012_v51 = vrot.slane %v1011_v50, 2  ;;  %v1018_v14 = vadd.f32 %v1017_v11, %v1016_v54 }
  0xf0   : > { %v1025_v53 = vadd.f32 %v1024_v18, %v1023_v39  ;;  %v1032_v25 = vadd.f32 %v1031_v12, %v1030_v60  ;;  %v1039_v59 = vadd.f32 %v1038_v52, %v1037_v6  ;;  %v992_v30 = vadd.f32 %v991_v13, %v990_v61 }
  0xf1   : > { %v999_v45 = vadd.f32 %v998_v22, %v997_v3  ;;  %v1006_v31 = vadd.f32 %v1005_v19, %v1004_v5  ;;  %v1013_v32 = vadd.f32 %v1012_v51, %v1011_v50  ;;  %v1019_v8 = vrot.slane %v1018_v14, 2 }
  0xf2   : > { %v1026_v9 = vrot.slane %v1025_v53, 2  ;;  %v1033_v35 = vrot.slane %v1032_v25, 2  ;;  %v1040_v38 = vrot.slane %v1039_v59, 2  ;;  %v993_v40 = vrot.slane %v992_v30, 1 }
  0xf3   : > { %v1000_v43 = vrot.slane %v999_v45, 1  ;;  %v1007_v15 = vrot.slane %v1006_v31, 1  ;;  %v1014_v7 = vrot.slane %v1013_v32, 1  ;;  %v1020_v28 = vadd.f32 %v1019_v8, %v1018_v14  ;;  %v2932_v8 = vld [vmem:[%s3280_s13 + $0x140] sm:$0xff]  }
  0xf4   : > { %v1027_v47 = vadd.f32 %v1026_v9, %v1025_v53  ;;  %v1034_v34 = vadd.f32 %v1033_v35, %v1032_v25  ;;  %v1041_v42 = vadd.f32 %v1040_v38, %v1039_v59  ;;  %v994_v49 = vadd.f32 %v993_v40, %v992_v30 }
  0xf5   : > { %v1001_v23 = vadd.f32 %v1000_v43, %v999_v45  ;;  %v1008_v33 = vadd.f32 %v1007_v15, %v1006_v31  ;;  %v1015_v26 = vadd.f32 %v1014_v7, %v1013_v32  ;;  %v1021_v20 = vrot.slane %v1020_v28, 1  ;;  %v2933_v43 = vld [vmem:[%s3280_s13 + $0x148] sm:$0xff]  }
  0xf6   : > { %v1028_v46 = vrot.slane %v1027_v47, 1  ;;  %v1035_v41 = vrot.slane %v1034_v34, 1  ;;  %v1042_v17 = vrot.slane %v1041_v42, 1  ;;  %v987_v16 = vadd.f32 %v986_v24, %v3618_v56 }
  0xf7   : > { %v1444_v27 = vmul.f32 0.125, %v3621_v57  ;;  %v1445_v37 = vmul.f32 0.125, %v3623_v58  ;;  %v1446_v48 = vmul.f32 0.125, %v3625_v36  ;;  %v1022_v10 = vadd.f32 %v1021_v20, %v1020_v28 }
  0xf8   : > { %v1029_v62 = vadd.f32 %v1028_v46, %v1027_v47  ;;  %v1036_v63 = vadd.f32 %v1035_v41, %v1034_v34  ;;  %v1043_v1 = vadd.f32 %v1042_v17, %v1041_v42  ;;  %v1447_v21 = vmul.f32 0.125, %v3627_v4  ;;  %v2934_v34 = vld [vmem:[%s3280_s13 + $0x150] sm:$0xff]  }
  0xf9   : > { %v1448_v2 = vmul.f32 0.125, %v966_v55  ;;  %v1449_v29 = vmul.f32 0.125, %v973_v44  ;;  %v1450_v54 = vmul.f32 0.125, %v980_v0  ;;  %v1452_v39 = vmul.f32 0.125, %v994_v49 }
  0xfa   : > { %v1453_v60 = vmul.f32 0.125, %v1001_v23  ;;  %v1454_v6 = vmul.f32 0.125, %v1008_v33  ;;  %v1455_v61 = vmul.f32 0.125, %v1015_v26  ;;  %v1451_v56 = vmul.f32 0.125, %v987_v16  ;;  %v2935_v26 = vld [vmem:[%s3280_s13 + $0x158] sm:$0xff]   ;;  %v3662_v16 = vld [vmem:[%s3280_s13 + $0x160] sm:$0xff]  }
  0xfb   : > { %v1456_v24 = vmul.f32 0.125, %v1022_v10  ;;  %v1457_v57 = vmul.f32 0.125, %v1029_v62  ;;  %v1458_v3 = vmul.f32 0.125, %v1036_v63  ;;  %v1459_v58 = vmul.f32 0.125, %v1043_v1  ;;  %v3667_v62 = vld [vmem:[%s3280_s13 + $0x168] sm:$0xff]  }
  0xfc   : > { %v1572_v5 = vpack.c.bf16 %v1444_v27, %v1444_v27  ;;  %v1573_v36 = vpack.c.bf16 %v1445_v37, %v1445_v37  ;;  %v1574_v50 = vpack.c.bf16 %v1446_v48, %v1446_v48  ;;  %v1575_v11 = vpack.c.bf16 %v1447_v21, %v1447_v21 }
  0xfd   : > { %v1576_v18 = vpack.c.bf16 %v1448_v2, %v1448_v2  ;;  %v1577_v12 = vpack.c.bf16 %v1449_v29, %v1449_v29  ;;  %v1578_v52 = vpack.c.bf16 %v1450_v54, %v1450_v54  ;;  %v1580_v4 = vpack.c.bf16 %v1452_v39, %v1452_v39  ;;  %v3672_v29 = vld [vmem:[%s3280_s13 + $0x170] sm:$0xff]  }
  0xfe   : > { %v1581_v55 = vpack.c.bf16 %v1453_v60, %v1453_v60  ;;  %v1582_v44 = vpack.c.bf16 %v1454_v6, %v1454_v6  ;;  %v1583_v0 = vpack.c.bf16 %v1455_v61, %v1455_v61  ;;  %v1579_v13 = vpack.c.bf16 %v1451_v56, %v1451_v56  ;;  %v3678_v61 = vld [vmem:[%s3280_s13 + $0x178] sm:$0xff]  }
  0xff   : > { %v1584_v22 = vpack.c.bf16 %v1456_v24, %v1456_v24  ;;  %v1585_v19 = vpack.c.bf16 %v1457_v57, %v1457_v57  ;;  %v1586_v51 = vpack.c.bf16 %v1458_v3, %v1458_v3  ;;  %v1587_v14 = vpack.c.bf16 %v1459_v58, %v1459_v58 }
 0x100   : > { %v1839_v53 = vunpack.c.l.b16 %v1572_v5  ;;  %v1840_v25 = vunpack.c.l.b16 %v1573_v36  ;;  %v1841_v59 = vunpack.c.l.b16 %v1574_v50  ;;  %v1842_v30 = vunpack.c.l.b16 %v1575_v11 }
 0x101   : > { %v1843_v45 = vunpack.c.l.b16 %v1576_v18  ;;  %v1844_v31 = vunpack.c.l.b16 %v1577_v12  ;;  %v1845_v32 = vunpack.c.l.b16 %v1578_v52  ;;  %v1847_v9 = vunpack.c.l.b16 %v1580_v4 }
 0x102   : > { %v1848_v35 = vunpack.c.l.b16 %v1581_v55  ;;  %v1849_v38 = vunpack.c.l.b16 %v1582_v44  ;;  %v1850_v40 = vunpack.c.l.b16 %v1583_v0  ;;  %v1846_v15 = vunpack.c.l.b16 %v1579_v13 }
 0x103   : > { %v1851_v7 = vunpack.c.l.b16 %v1584_v22  ;;  %v1852_v28 = vunpack.c.l.b16 %v1585_v19  ;;  %v1853_v47 = vunpack.c.l.b16 %v1586_v51  ;;  %v1854_v42 = vunpack.c.l.b16 %v1587_v14 }
 0x104   : > { %v1966_v49 = vsel %vm1903_vm1, %v1840_v25, %v1839_v53  ;;  %v1973_v23 = vsel %vm1903_vm1, %v1848_v35, %v1847_v9  ;;  %v2799_v33 = vunpack.c.l.bf16 %v2932_v8  ;;  %v2800_v41 = vunpack.c.h.bf16 %v2932_v8 }
 0x105   : > { %v1967_v20 = vsel %vm1905_vm2, %v1841_v59, %v1966_v49  ;;  %v1974_v46 = vsel %vm1905_vm2, %v1849_v38, %v1973_v23  ;;  %v2803_v17 = vunpack.c.l.bf16 %v2933_v43  ;;  %v2804_v48 = vunpack.c.h.bf16 %v2933_v43 }
 0x106   : > { %v1968_v27 = vsel %vm1907_vm3, %v1842_v30, %v1967_v20  ;;  %v1975_v37 = vsel %vm1907_vm3, %v1850_v40, %v1974_v46  ;;  %v2807_v10 = vunpack.c.l.bf16 %v2934_v34  ;;  %v2808_v21 = vunpack.c.h.bf16 %v2934_v34 }
 0x107   : > { %v1969_v63 = vsel %vm1909_vm4, %v1843_v45, %v1968_v27  ;;  %v1976_v1 = vsel %vm1909_vm4, %v1851_v7, %v1975_v37  ;;  %v2811_v2 = vunpack.c.l.bf16 %v2935_v26  ;;  %v2812_v60 = vunpack.c.h.bf16 %v2935_v26 }
 0x108   : > { %v1970_v54 = vsel %vm1911_vm5, %v1844_v31, %v1969_v63  ;;  %v1977_v39 = vsel %vm1911_vm5, %v1852_v28, %v1976_v1  ;;  %v2815_v6 = vunpack.c.l.bf16 %v3662_v16  ;;  %v2816_v57 = vunpack.c.h.bf16 %v3662_v16 }
 0x109   : > { %v1971_v56 = vsel %vm1913_vm6, %v1845_v32, %v1970_v54  ;;  %v1978_v24 = vsel %vm1913_vm6, %v1853_v47, %v1977_v39  ;;  %v2819_v3 = vunpack.c.l.bf16 %v3667_v62  ;;  %v2820_v36 = vunpack.c.h.bf16 %v3667_v62  ;;  %v3060_v62 = vld [vmem:[%s4176_s3 + $0x8] sm:$0xff]  }
 0x10a   : > { %v1972_v58 = vsel %vm1915_vm7, %v1846_v15, %v1971_v56  ;;  %v1979_v5 = vsel %vm1915_vm7, %v1854_v42, %v1978_v24  ;;  %v2823_v50 = vunpack.c.l.bf16 %v3672_v29  ;;  %v2824_v18 = vunpack.c.h.bf16 %v3672_v29 }
 0x10b   : > { %v2026_v11 = vpack.c.b16 %v1979_v5, %v1972_v58  ;;  %v2827_v12 = vunpack.c.l.bf16 %v3678_v61  ;;  %v1044_v52 = vsel %vm483_vm0, %v2799_v33, 0.0  ;;  %v1051_v55 = vsel %vm483_vm0, %v2800_v41, 0.0 }
 0x10c   : > { %v1045_v4 = vrot.slane %v1044_v52, 4  ;;  %v1058_v44 = vsel %vm483_vm0, %v2803_v17, 0.0  ;;  %v1065_v0 = vsel %vm483_vm0, %v2804_v48, 0.0  ;;  %v1052_v13 = vrot.slane %v1051_v55, 4 }
 0x10d   : > { %2988 = vmatprep.mubr.msk.bf16.mxu0 %vm483_vm0, %v2026_v11  ;;  %v1059_v22 = vrot.slane %v1058_v44, 4  ;;  %v1066_v19 = vrot.slane %v1065_v0, 4  ;;  %v1072_v51 = vsel %vm483_vm0, %v2807_v10, 0.0  ;;  %v1079_v25 = vsel %vm483_vm0, %v2808_v21, 0.0 }
 0x10e   : > { %v1046_v14 = vadd.f32 %v1045_v4, %v1044_v52  ;;  %v1073_v53 = vrot.slane %v1072_v51, 4  ;;  %v1086_v59 = vsel %vm483_vm0, %v2811_v2, 0.0  ;;  %v1053_v30 = vadd.f32 %v1052_v13, %v1051_v55 }
 0x10f   : > { %v1060_v45 = vadd.f32 %v1059_v22, %v1058_v44  ;;  %v1067_v31 = vadd.f32 %v1066_v19, %v1065_v0  ;;  %v1080_v32 = vrot.slane %v1079_v25, 4  ;;  %v1087_v35 = vrot.slane %v1086_v59, 4 }
 0x110   : > { %v1047_v8 = vrot.slane %v1046_v14, 2  ;;  %v1074_v9 = vadd.f32 %v1073_v53, %v1072_v51  ;;  %v1093_v38 = vsel %vm483_vm0, %v2812_v60, 0.0  ;;  %v1054_v40 = vrot.slane %v1053_v30, 2 }
 0x111   : > { %v1061_v43 = vrot.slane %v1060_v45, 2  ;;  %v1068_v15 = vrot.slane %v1067_v31, 2  ;;  %v1081_v7 = vadd.f32 %v1080_v32, %v1079_v25  ;;  %v1088_v34 = vadd.f32 %v1087_v35, %v1086_v59  ;;  %v3059_v59 = vld [vmem:[%s4176_s3] sm:$0xff]  }
 0x112   : > { %v1048_v28 = vadd.f32 %v1047_v8, %v1046_v14  ;;  %v1075_v47 = vrot.slane %v1074_v9, 2  ;;  %v1094_v42 = vrot.slane %v1093_v38, 4  ;;  %v1055_v49 = vadd.f32 %v1054_v40, %v1053_v30  ;;  %2996 = vmatprep.subr.bf16.mxu1 %v3059_v59 }
 0x113   : > { %v1062_v23 = vadd.f32 %v1061_v43, %v1060_v45  ;;  %v1069_v33 = vadd.f32 %v1068_v15, %v1067_v31  ;;  %v1082_v26 = vrot.slane %v1081_v7, 2  ;;  %v1089_v41 = vrot.slane %v1088_v34, 2  ;;  %2997 = vmatpush3.bf16.msra.mxu1 %v3059_v59 }
 0x114   : > { %v1049_v20 = vrot.slane %v1048_v28, 1  ;;  %v1076_v46 = vadd.f32 %v1075_v47, %v1074_v9  ;;  %v1095_v17 = vadd.f32 %v1094_v42, %v1093_v38  ;;  %v1056_v27 = vrot.slane %v1055_v49, 1  ;;  %2998 = vmatprep.subr.bf16.mxu1 %v3060_v62 }
 0x115   : > { %v1063_v37 = vrot.slane %v1062_v23, 1  ;;  %v1070_v48 = vrot.slane %v1069_v33, 1  ;;  %v1083_v10 = vadd.f32 %v1082_v26, %v1081_v7  ;;  %v2828_v63 = vunpack.c.h.bf16 %v3678_v61 }
 0x116   : > { %v1077_v1 = vrot.slane %v1076_v46, 1  ;;  %v1090_v21 = vadd.f32 %v1089_v41, %v1088_v34  ;;  %v1096_v2 = vrot.slane %v1095_v17, 2  ;;  %v3700_v54 = vadd.f32 %v1049_v20, %v1048_v28 }
 0x117   : > { %v3702_v39 = vadd.f32 %v1056_v27, %v1055_v49  ;;  %v3704_v60 = vadd.f32 %v1063_v37, %v1062_v23  ;;  %v1084_v56 = vrot.slane %v1083_v10, 1  ;;  %v3706_v24 = vadd.f32 %v1070_v48, %v1069_v33  ;;  %2999 = vmatpush3.bf16.msra.mxu1 %v3060_v62 }
 0x118   : > { %v1091_v58 = vrot.slane %v1090_v21, 1  ;;  %v1097_v5 = vadd.f32 %v1096_v2, %v1095_v17  ;;  %v1100_v11 = vsel %vm483_vm0, %v2815_v6, 0.0  ;;  %v3711_v52 = vadd.f32 %v1077_v1, %v1076_v46 }
 0x119   : > { %v1101_v4 = vrot.slane %v1100_v11, 4  ;;  %v1107_v55 = vsel %vm483_vm0, %v2816_v57, 0.0  ;;  %v1114_v44 = vsel %vm483_vm0, %v2819_v3, 0.0  ;;  %v3719_v0 = vadd.f32 %v1084_v56, %v1083_v10 }
 0x11a   : > { %v3721_v13 = vadd.f32 %v1091_v58, %v1090_v21  ;;  %v1108_v22 = vrot.slane %v1107_v55, 4  ;;  %v1115_v19 = vrot.slane %v1114_v44, 4  ;;  %v1121_v6 = vsel %vm483_vm0, %v2820_v36, 0.0 }
 0x11b   : > { %v1102_v51 = vadd.f32 %v1101_v4, %v1100_v11  ;;  %v1128_v16 = vsel %vm483_vm0, %v2823_v50, 0.0  ;;  %v1135_v57 = vsel %vm483_vm0, %v2824_v18, 0.0  ;;  %v1098_v3 = vrot.slane %v1097_v5, 1 }
 0x11c   : > { %v1109_v14 = vadd.f32 %v1108_v22, %v1107_v55  ;;  %v1116_v53 = vadd.f32 %v1115_v19, %v1114_v44  ;;  %v1122_v25 = vrot.slane %v1121_v6, 4  ;;  %v1129_v30 = vrot.slane %v1128_v16, 4 }
 0x11d   : > { %v1103_v36 = vrot.slane %v1102_v51, 2  ;;  %v1136_v45 = vrot.slane %v1135_v57, 4  ;;  %v1142_v29 = vsel %vm483_vm0, %v2827_v12, 0.0  ;;  %v1149_v38 = vsel %vm483_vm0, %v2828_v63, 0.0 }
 0x11e   : > { %v1110_v50 = vrot.slane %v1109_v14, 2  ;;  %v1117_v18 = vrot.slane %v1116_v53, 2  ;;  %v1123_v31 = vadd.f32 %v1122_v25, %v1121_v6  ;;  %v1143_v32 = vrot.slane %v1142_v29, 4 }
 0x11f   : > { %v1104_v8 = vadd.f32 %v1103_v36, %v1102_v51  ;;  %v1130_v9 = vadd.f32 %v1129_v30, %v1128_v16  ;;  %v1137_v35 = vadd.f32 %v1136_v45, %v1135_v57  ;;  %v1150_v12 = vrot.slane %v1149_v38, 4 }
 0x120   : > { %v1111_v40 = vadd.f32 %v1110_v50, %v1109_v14  ;;  %v1118_v43 = vadd.f32 %v1117_v18, %v1116_v53  ;;  %v1124_v15 = vrot.slane %v1123_v31, 2  ;;  %v1144_v7 = vadd.f32 %v1143_v32, %v1142_v29 }
 0x121   : > { %v1105_v28 = vrot.slane %v1104_v8, 1  ;;  %v1131_v61 = vrot.slane %v1130_v9, 2  ;;  %v1138_v47 = vrot.slane %v1137_v35, 2  ;;  %v1099_v33 = vadd.f32 %v1098_v3, %v1097_v5 }
 0x122   : > { %v1112_v34 = vrot.slane %v1111_v40, 1  ;;  %v1119_v42 = vrot.slane %v1118_v43, 1  ;;  %v1125_v49 = vadd.f32 %v1124_v15, %v1123_v31  ;;  %v1145_v23 = vrot.slane %v1144_v7, 2 }
 0x123   : > { %v1132_v26 = vadd.f32 %v1131_v61, %v1130_v9  ;;  %v1139_v20 = vadd.f32 %v1138_v47, %v1137_v35  ;;  %v1151_v46 = vadd.f32 %v1150_v12, %v1149_v38  ;;  %v1106_v41 = vadd.f32 %v1105_v28, %v1104_v8 }
 0x124   : > { %v1113_v17 = vadd.f32 %v1112_v34, %v1111_v40  ;;  %v1126_v27 = vrot.slane %v1125_v49, 1  ;;  %v1146_v37 = vadd.f32 %v1145_v23, %v1144_v7  ;;  %v1120_v48 = vadd.f32 %v1119_v42, %v1118_v43  ;;  %v2940_v34 = vld [vmem:[%s3280_s13 + $0x180] sm:$0xff]  }
 0x125   : > { %v1133_v10 = vrot.slane %v1132_v26, 1  ;;  %v1140_v63 = vrot.slane %v1139_v20, 1  ;;  %v1152_v1 = vrot.slane %v1151_v46, 2  ;;  %v1460_v56 = vmul.f32 0.125, %v3700_v54 }
 0x126   : > { %v1127_v21 = vadd.f32 %v1126_v27, %v1125_v49  ;;  %v1147_v2 = vrot.slane %v1146_v37, 1  ;;  %v1461_v58 = vmul.f32 0.125, %v3702_v39  ;;  %v1462_v55 = vmul.f32 0.125, %v3704_v60  ;;  %v2942_v27 = vld [vmem:[%s3280_s13 + $0x190] sm:$0xff]  }
 0x127   : > { %v1134_v11 = vadd.f32 %v1133_v10, %v1132_v26  ;;  %v1141_v5 = vadd.f32 %v1140_v63, %v1139_v20  ;;  %v1153_v4 = vadd.f32 %v1152_v1, %v1151_v46  ;;  %v1463_v22 = vmul.f32 0.125, %v3706_v24  ;;  %v2941_v26 = vld [vmem:[%s3280_s13 + $0x188] sm:$0xff]   ;;  %v2943_v1 = vld [vmem:[%s3280_s13 + $0x198] sm:$0xff]  }
 0x128   : > { %v1148_v44 = vadd.f32 %v1147_v2, %v1146_v37  ;;  %v1464_v19 = vmul.f32 0.125, %v3711_v52  ;;  %v1465_v51 = vmul.f32 0.125, %v3719_v0  ;;  %v1466_v16 = vmul.f32 0.125, %v3721_v13 }
 0x129   : > { %v1154_v6 = vrot.slane %v1153_v4, 1  ;;  %v1467_v57 = vmul.f32 0.125, %v1099_v33  ;;  %v1468_v3 = vmul.f32 0.125, %v1106_v41  ;;  %v1469_v54 = vmul.f32 0.125, %v1113_v17 }
 0x12a   : > { %v1470_v14 = vmul.f32 0.125, %v1120_v48  ;;  %v1471_v39 = vmul.f32 0.125, %v1127_v21  ;;  %v1472_v53 = vmul.f32 0.125, %v1134_v11  ;;  %v1473_v59 = vmul.f32 0.125, %v1141_v5  ;;  %v3759_v11 = vld [vmem:[%s3280_s13 + $0x1a0] sm:$0xff]  }
 0x12b   : > { %v1155_v25 = vadd.f32 %v1154_v6, %v1153_v4  ;;  %v1474_v62 = vmul.f32 0.125, %v1148_v44  ;;  %v1588_v60 = vpack.c.bf16 %v1460_v56, %v1460_v56  ;;  %v1589_v36 = vpack.c.bf16 %v1461_v58, %v1461_v58 }
 0x12c   : > { %v1590_v30 = vpack.c.bf16 %v1462_v55, %v1462_v55  ;;  %v1591_v24 = vpack.c.bf16 %v1463_v22, %v1463_v22  ;;  %v1592_v45 = vpack.c.bf16 %v1464_v19, %v1464_v19  ;;  %v1593_v29 = vpack.c.bf16 %v1465_v51, %v1465_v51  ;;  %v3764_v22 = vld [vmem:[%s3280_s13 + $0x1a8] sm:$0xff]  }
 0x12d   : > { %v1475_v52 = vmul.f32 0.125, %v1155_v25  ;;  %v1594_v0 = vpack.c.bf16 %v1466_v16, %v1466_v16  ;;  %v1596_v50 = vpack.c.bf16 %v1468_v3, %v1468_v3  ;;  %v1595_v18 = vpack.c.bf16 %v1467_v57, %v1467_v57  ;;  %v3769_v57 = vld [vmem:[%s3280_s13 + $0x1b0] sm:$0xff]  }
 0x12e   : > { %v1597_v13 = vpack.c.bf16 %v1469_v54, %v1469_v54  ;;  %v1598_v31 = vpack.c.bf16 %v1470_v14, %v1470_v14  ;;  %v1599_v32 = vpack.c.bf16 %v1471_v39, %v1471_v39  ;;  %v1600_v8 = vpack.c.bf16 %v1472_v53, %v1472_v53  ;;  %v3775_v53 = vld [vmem:[%s3280_s13 + $0x1b8] sm:$0xff]  }
 0x12f   : > { %v1601_v9 = vpack.c.bf16 %v1473_v59, %v1473_v59  ;;  %v1602_v35 = vpack.c.bf16 %v1474_v62, %v1474_v62  ;;  %v1855_v38 = vunpack.c.l.b16 %v1588_v60  ;;  %v1603_v40 = vpack.c.bf16 %v1475_v52, %v1475_v52 }
 0x130   : > { %v1856_v43 = vunpack.c.l.b16 %v1589_v36  ;;  %v1857_v15 = vunpack.c.l.b16 %v1590_v30  ;;  %v1858_v7 = vunpack.c.l.b16 %v1591_v24  ;;  %v1859_v28 = vunpack.c.l.b16 %v1592_v45 }
 0x131   : > { %v1860_v61 = vunpack.c.l.b16 %v1593_v29  ;;  %v1861_v47 = vunpack.c.l.b16 %v1594_v0  ;;  %v1863_v12 = vunpack.c.l.b16 %v1596_v50  ;;  %v1862_v42 = vunpack.c.l.b16 %v1595_v18 }
 0x132   : > { %v1864_v49 = vunpack.c.l.b16 %v1597_v13  ;;  %v1865_v23 = vunpack.c.l.b16 %v1598_v31  ;;  %v1866_v33 = vunpack.c.l.b16 %v1599_v32  ;;  %v1867_v20 = vunpack.c.l.b16 %v1600_v8 }
 0x133   : > { %v1868_v46 = vunpack.c.l.b16 %v1601_v9  ;;  %v1869_v41 = vunpack.c.l.b16 %v1602_v35  ;;  %v1980_v17 = vsel %vm1903_vm1, %v1856_v43, %v1855_v38  ;;  %v1870_v37 = vunpack.c.l.b16 %v1603_v40 }
 0x134   : > { %v1981_v48 = vsel %vm1905_vm2, %v1857_v15, %v1980_v17  ;;  %v1987_v10 = vsel %vm1903_vm1, %v1864_v49, %v1863_v12  ;;  %v2831_v63 = vunpack.c.l.bf16 %v2940_v34  ;;  %v2832_v56 = vunpack.c.h.bf16 %v2940_v34 }
 0x135   : > { %v1982_v21 = vsel %vm1907_vm3, %v1858_v7, %v1981_v48  ;;  %v1988_v2 = vsel %vm1905_vm2, %v1865_v23, %v1987_v10  ;;  %v2835_v58 = vunpack.c.l.bf16 %v2941_v26  ;;  %v2836_v55 = vunpack.c.h.bf16 %v2941_v26 }
 0x136   : > { %v1983_v5 = vsel %vm1909_vm4, %v1859_v28, %v1982_v21  ;;  %v1989_v4 = vsel %vm1907_vm3, %v1866_v33, %v1988_v2  ;;  %v2839_v44 = vunpack.c.l.bf16 %v2942_v27  ;;  %v2840_v6 = vunpack.c.h.bf16 %v2942_v27 }
 0x137   : > { %v1984_v19 = vsel %vm1911_vm5, %v1860_v61, %v1983_v5  ;;  %v1990_v51 = vsel %vm1909_vm4, %v1867_v20, %v1989_v4  ;;  %v2843_v16 = vunpack.c.l.bf16 %v2943_v1  ;;  %v2844_v14 = vunpack.c.h.bf16 %v2943_v1 }
 0x138   : > { %v1985_v3 = vsel %vm1913_vm6, %v1861_v47, %v1984_v19  ;;  %v1991_v54 = vsel %vm1911_vm5, %v1868_v46, %v1990_v51  ;;  %v2847_v39 = vunpack.c.l.bf16 %v3759_v11  ;;  %v2848_v62 = vunpack.c.h.bf16 %v3759_v11 }
 0x139   : > { %v1986_v25 = vsel %vm1915_vm7, %v1862_v42, %v1985_v3  ;;  %v1992_v59 = vsel %vm1913_vm6, %v1869_v41, %v1991_v54  ;;  %v2851_v60 = vunpack.c.l.bf16 %v3764_v22  ;;  %v2852_v30 = vunpack.c.h.bf16 %v3764_v22 }
 0x13a   : > { %v1993_v36 = vsel %vm1915_vm7, %v1870_v37, %v1992_v59  ;;  %v2855_v24 = vunpack.c.l.bf16 %v3769_v57  ;;  %v2856_v45 = vunpack.c.h.bf16 %v3769_v57  ;;  %v2859_v29 = vunpack.c.l.bf16 %v3775_v53 }
 0x13b   : > { %v2027_v52 = vpack.c.b16 %v1993_v36, %v1986_v25  ;;  %v1156_v0 = vsel %vm483_vm0, %v2831_v63, 0.0  ;;  %v1163_v50 = vsel %vm483_vm0, %v2832_v56, 0.0  ;;  %v1170_v31 = vsel %vm483_vm0, %v2835_v58, 0.0 }
 0x13c   : > { %v1157_v18 = vrot.slane %v1156_v0, 4  ;;  %v1164_v13 = vrot.slane %v1163_v50, 4  ;;  %v1177_v32 = vsel %vm483_vm0, %v2836_v55, 0.0  ;;  %v1171_v8 = vrot.slane %v1170_v31, 4 }
 0x13d   : > { %2989 = vmatmul.mubr.msk.bf16.gmra.mrb[8].mxu0 %vm483_vm0, %v2027_v52  ;;  %v1178_v9 = vrot.slane %v1177_v32, 4  ;;  %v1184_v35 = vsel %vm483_vm0, %v2839_v44, 0.0  ;;  %v1191_v38 = vsel %vm483_vm0, %v2840_v6, 0.0  ;;  %v1198_v47 = vsel %vm483_vm0, %v2843_v16, 0.0 }
 0x13e   : > { %v1158_v40 = vadd.f32 %v1157_v18, %v1156_v0  ;;  %v1165_v43 = vadd.f32 %v1164_v13, %v1163_v50  ;;  %v1185_v15 = vrot.slane %v1184_v35, 4  ;;  %v1192_v7 = vrot.slane %v1191_v38, 4 }
 0x13f   : > { %v1172_v28 = vadd.f32 %v1171_v8, %v1170_v31  ;;  %v1179_v61 = vadd.f32 %v1178_v9, %v1177_v32  ;;  %v1205_v12 = vsel %vm483_vm0, %v2844_v14, 0.0  ;;  %v1199_v20 = vrot.slane %v1198_v47, 4 }
 0x140   : > { %v1159_v34 = vrot.slane %v1158_v40, 2  ;;  %v1166_v42 = vrot.slane %v1165_v43, 2  ;;  %v1186_v49 = vadd.f32 %v1185_v15, %v1184_v35  ;;  %v1193_v23 = vadd.f32 %v1192_v7, %v1191_v38 }
 0x141   : > { %v1173_v33 = vrot.slane %v1172_v28, 2  ;;  %v1180_v26 = vrot.slane %v1179_v61, 2  ;;  %v1206_v46 = vrot.slane %v1205_v12, 4  ;;  %v1200_v63 = vadd.f32 %v1199_v20, %v1198_v47 }
 0x142   : > { %v1160_v41 = vadd.f32 %v1159_v34, %v1158_v40  ;;  %v1167_v17 = vadd.f32 %v1166_v42, %v1165_v43  ;;  %v1187_v27 = vrot.slane %v1186_v49, 2  ;;  %v1194_v37 = vrot.slane %v1193_v23, 2 }
 0x143   : > { %v1174_v48 = vadd.f32 %v1173_v33, %v1172_v28  ;;  %v1181_v10 = vadd.f32 %v1180_v26, %v1179_v61  ;;  %v1207_v1 = vadd.f32 %v1206_v46, %v1205_v12  ;;  %v1201_v55 = vrot.slane %v1200_v63, 2 }
 0x144   : > { %v1161_v21 = vrot.slane %v1160_v41, 1  ;;  %v1168_v2 = vrot.slane %v1167_v17, 1  ;;  %v1188_v56 = vadd.f32 %v1187_v27, %v1186_v49  ;;  %v1195_v58 = vadd.f32 %v1194_v37, %v1193_v23 }
 0x145   : > { %v1175_v5 = vrot.slane %v1174_v48, 1  ;;  %v1182_v4 = vrot.slane %v1181_v10, 1  ;;  %v1208_v44 = vrot.slane %v1207_v1, 2  ;;  %v2860_v19 = vunpack.c.h.bf16 %v3775_v53 }
 0x146   : > { %v3796_v51 = vadd.f32 %v1161_v21, %v1160_v41  ;;  %v1189_v6 = vrot.slane %v1188_v56, 1  ;;  %v1196_v16 = vrot.slane %v1195_v58, 1  ;;  %v3798_v3 = vadd.f32 %v1168_v2, %v1167_v17 }
 0x147   : > { %v3800_v54 = vadd.f32 %v1175_v5, %v1174_v48  ;;  %v1202_v14 = vadd.f32 %v1201_v55, %v1200_v63  ;;  %v1209_v25 = vadd.f32 %v1208_v44, %v1207_v1  ;;  %v3802_v59 = vadd.f32 %v1182_v4, %v1181_v10 }
 0x148   : > { %v3804_v36 = vadd.f32 %v1189_v6, %v1188_v56  ;;  %v1212_v52 = vsel %vm483_vm0, %v2847_v39, 0.0  ;;  %v1219_v0 = vsel %vm483_vm0, %v2848_v62, 0.0  ;;  %v3810_v50 = vadd.f32 %v1196_v16, %v1195_v58 }
 0x149   : > { %v1203_v18 = vrot.slane %v1202_v14, 1  ;;  %v1213_v13 = vrot.slane %v1212_v52, 4  ;;  %v1220_v31 = vrot.slane %v1219_v0, 4  ;;  %v1226_v32 = vsel %vm483_vm0, %v2851_v60, 0.0 }
 0x14a   : > { %v1233_v8 = vsel %vm483_vm0, %v2852_v30, 0.0  ;;  %v1240_v11 = vsel %vm483_vm0, %v2855_v24, 0.0  ;;  %v1247_v39 = vsel %vm483_vm0, %v2856_v45, 0.0  ;;  %v1210_v9 = vrot.slane %v1209_v25, 1 }
 0x14b   : > { %v1204_v62 = vadd.f32 %v1203_v18, %v1202_v14  ;;  %v1214_v35 = vadd.f32 %v1213_v13, %v1212_v52  ;;  %v1221_v38 = vadd.f32 %v1220_v31, %v1219_v0  ;;  %v1227_v40 = vrot.slane %v1226_v32, 4 }
 0x14c   : > { %v1234_v43 = vrot.slane %v1233_v8, 4  ;;  %v1241_v15 = vrot.slane %v1240_v11, 4  ;;  %v1248_v60 = vrot.slane %v1247_v39, 4  ;;  %v1254_v30 = vsel %vm483_vm0, %v2859_v29, 0.0 }
 0x14d   : > { %v1215_v7 = vrot.slane %v1214_v35, 2  ;;  %v1222_v22 = vrot.slane %v1221_v38, 2  ;;  %v1261_v24 = vsel %vm483_vm0, %v2860_v19, 0.0  ;;  %v1228_v28 = vadd.f32 %v1227_v40, %v1226_v32 }
 0x14e   : > { %v1235_v57 = vadd.f32 %v1234_v43, %v1233_v8  ;;  %v1242_v61 = vadd.f32 %v1241_v15, %v1240_v11  ;;  %v1249_v45 = vadd.f32 %v1248_v60, %v1247_v39  ;;  %v1255_v34 = vrot.slane %v1254_v30, 4 }
 0x14f   : > { %v1216_v47 = vadd.f32 %v1215_v7, %v1214_v35  ;;  %v1223_v12 = vadd.f32 %v1222_v22, %v1221_v38  ;;  %v1262_v42 = vrot.slane %v1261_v24, 4  ;;  %v1229_v49 = vrot.slane %v1228_v28, 2 }
 0x150   : > { %v1236_v23 = vrot.slane %v1235_v57, 2  ;;  %v1243_v33 = vrot.slane %v1242_v61, 2  ;;  %v1250_v26 = vrot.slane %v1249_v45, 2  ;;  %v1256_v41 = vadd.f32 %v1255_v34, %v1254_v30 }
 0x151   : > { %v1217_v20 = vrot.slane %v1216_v47, 1  ;;  %v1224_v46 = vrot.slane %v1223_v12, 1  ;;  %v1263_v53 = vadd.f32 %v1262_v42, %v1261_v24  ;;  %v3828_v17 = vpop.f32.mrb[0].mxu0  ;;  %v1230_v29 = vadd.f32 %v1229_v49, %v1228_v28 }
 0x152   : > { %v1237_v27 = vadd.f32 %v1236_v23, %v1235_v57  ;;  %v1244_v37 = vadd.f32 %v1243_v33, %v1242_v61  ;;  %v1251_v48 = vadd.f32 %v1250_v26, %v1249_v45  ;;  %v3830_v10 = vpop.f32.mrb[1].mxu0  ;;  %v1211_v63 = vadd.f32 %v1210_v9, %v1209_v25 }
 0x153   : > { %v1218_v1 = vadd.f32 %v1217_v20, %v1216_v47  ;;  %v1257_v21 = vrot.slane %v1256_v41, 2  ;;  %v1264_v2 = vrot.slane %v1263_v53, 2  ;;  %v3832_v56 = vpop.f32.mrb[2].mxu0  ;;  %v1231_v58 = vrot.slane %v1230_v29, 1 }
 0x154   : > { %v1238_v5 = vrot.slane %v1237_v27, 1  ;;  %v1245_v4 = vrot.slane %v1244_v37, 1  ;;  %v1252_v55 = vrot.slane %v1251_v48, 1  ;;  %v3834_v44 = vpop.f32.mrb[3].mxu0  ;;  %v1225_v19 = vadd.f32 %v1224_v46, %v1223_v12 }
 0x155   : > { %v1258_v6 = vadd.f32 %v1257_v21, %v1256_v41  ;;  %v1265_v16 = vadd.f32 %v1264_v2, %v1263_v53  ;;  %v1476_v14 = vmul.f32 0.125, %v3796_v51  ;;  %v1232_v52 = vadd.f32 %v1231_v58, %v1230_v29 }
 0x156   : > { %v1239_v0 = vadd.f32 %v1238_v5, %v1237_v27  ;;  %v1246_v18 = vadd.f32 %v1245_v4, %v1244_v37  ;;  %v1477_v25 = vmul.f32 0.125, %v3798_v3  ;;  %v1253_v13 = vadd.f32 %v1252_v55, %v1251_v48  ;;  %v2949_v5 = vld [vmem:[%s3280_s13 + $0x1c8] sm:$0xff]  }
 0x157   : > { %v1259_v31 = vrot.slane %v1258_v6, 1  ;;  %v1266_v32 = vrot.slane %v1265_v16, 1  ;;  %v1478_v8 = vmul.f32 0.125, %v3800_v54  ;;  %v1479_v11 = vmul.f32 0.125, %v3802_v59 }
 0x158   : > { %v1480_v39 = vmul.f32 0.125, %v3804_v36  ;;  %v1481_v9 = vmul.f32 0.125, %v3810_v50  ;;  %v1482_v35 = vmul.f32 0.125, %v1204_v62  ;;  %v1484_v51 = vmul.f32 0.125, %v1218_v1 }
 0x159   : > { %v1260_v38 = vadd.f32 %v1259_v31, %v1258_v6  ;;  %v1267_v40 = vadd.f32 %v1266_v32, %v1265_v16  ;;  %v1485_v43 = vmul.f32 0.125, %v1225_v19  ;;  %v1483_v15 = vmul.f32 0.125, %v1211_v63  ;;  %v2948_v63 = vld [vmem:[%s3280_s13 + $0x1c0] sm:$0xff]   ;;  %v2950_v16 = vld [vmem:[%s3280_s13 + $0x1d0] sm:$0xff]  }
 0x15a   : > { %v1486_v60 = vmul.f32 0.125, %v1232_v52  ;;  %v1487_v7 = vmul.f32 0.125, %v1239_v0  ;;  %v1488_v3 = vmul.f32 0.125, %v1246_v18  ;;  %v1489_v22 = vmul.f32 0.125, %v1253_v13 }
 0x15b   : > { %v1490_v30 = vmul.f32 0.125, %v1260_v38  ;;  %v1604_v24 = vpack.c.bf16 %v1476_v14, %v1476_v14  ;;  %v1605_v28 = vpack.c.bf16 %v1477_v25, %v1477_v25  ;;  %v1491_v54 = vmul.f32 0.125, %v1267_v40  ;;  %v2951_v25 = vld [vmem:[%s3280_s13 + $0x1d8] sm:$0xff]   ;;  %v3858_v40 = vld [vmem:[%s3280_s13 + $0x1e8] sm:$0xff]  }
 0x15c   : > { %v1606_v57 = vpack.c.bf16 %v1478_v8, %v1478_v8  ;;  %v1607_v59 = vpack.c.bf16 %v1479_v11, %v1479_v11  ;;  %v1608_v61 = vpack.c.bf16 %v1480_v39, %v1480_v39  ;;  %v1609_v36 = vpack.c.bf16 %v1481_v9, %v1481_v9  ;;  %v3853_v11 = vld [vmem:[%s3280_s13 + $0x1e0] sm:$0xff]  }
 0x15d   : > { %v1610_v45 = vpack.c.bf16 %v1482_v35, %v1482_v35  ;;  %v1612_v50 = vpack.c.bf16 %v1484_v51, %v1484_v51  ;;  %v1613_v62 = vpack.c.bf16 %v1485_v43, %v1485_v43  ;;  %v1611_v47 = vpack.c.bf16 %v1483_v15, %v1483_v15 }
 0x15e   : > { %v1614_v12 = vpack.c.bf16 %v1486_v60, %v1486_v60  ;;  %v1615_v34 = vpack.c.bf16 %v1487_v7, %v1487_v7  ;;  %v1616_v42 = vpack.c.bf16 %v1488_v3, %v1488_v3  ;;  %v1617_v49 = vpack.c.bf16 %v1489_v22, %v1489_v22  ;;  %v3863_v7 = vld [vmem:[%s3280_s13 + $0x1f0] sm:$0xff]  }
 0x15f   : > { %v1618_v23 = vpack.c.bf16 %v1490_v30, %v1490_v30  ;;  %v1871_v33 = vunpack.c.l.b16 %v1604_v24  ;;  %v1872_v26 = vunpack.c.l.b16 %v1605_v28  ;;  %v1619_v20 = vpack.c.bf16 %v1491_v54, %v1491_v54  ;;  %v3869_v28 = vld [vmem:[%s3280_s13 + $0x1f8] sm:$0xff]   ;;  %s4123_s13 = scalar_lea.hbm %s4178_s5, %s2636_s9 }
 0x160   : > { %v1873_v46 = vunpack.c.l.b16 %v1606_v57  ;;  %v1874_v41 = vunpack.c.l.b16 %v1607_v59  ;;  %v1875_v53 = vunpack.c.l.b16 %v1608_v61  ;;  %v1876_v29 = vunpack.c.l.b16 %v1609_v36 }
 0x161   : > { %v1877_v27 = vunpack.c.l.b16 %v1610_v45  ;;  %v1879_v37 = vunpack.c.l.b16 %v1612_v50  ;;  %v1880_v48 = vunpack.c.l.b16 %v1613_v62  ;;  %v1878_v1 = vunpack.c.l.b16 %v1611_v47 }
 0x162   : > { %v1881_v21 = vunpack.c.l.b16 %v1614_v12  ;;  %v1882_v2 = vunpack.c.l.b16 %v1615_v34  ;;  %v1883_v58 = vunpack.c.l.b16 %v1616_v42  ;;  %v1884_v4 = vunpack.c.l.b16 %v1617_v49 }
 0x163   : > { %v1885_v55 = vunpack.c.l.b16 %v1618_v23  ;;  %v1994_v19 = vsel %vm1903_vm1, %v1872_v26, %v1871_v33  ;;  %v2001_v6 = vsel %vm1903_vm1, %v1880_v48, %v1879_v37  ;;  %v1886_v14 = vunpack.c.l.b16 %v1619_v20 }
 0x164   : > { %v1995_v52 = vsel %vm1905_vm2, %v1873_v46, %v1994_v19  ;;  %v2002_v0 = vsel %vm1905_vm2, %v1881_v21, %v2001_v6  ;;  %v2863_v18 = vunpack.c.l.bf16 %v2948_v63  ;;  %v2864_v32 = vunpack.c.h.bf16 %v2948_v63 }
 0x165   : > { %v1996_v13 = vsel %vm1907_vm3, %v1874_v41, %v1995_v52  ;;  %v2003_v31 = vsel %vm1907_vm3, %v1882_v2, %v2002_v0  ;;  %v2867_v8 = vunpack.c.l.bf16 %v2949_v5  ;;  %v2868_v35 = vunpack.c.h.bf16 %v2949_v5 }
 0x166   : > { %v1997_v39 = vsel %vm1909_vm4, %v1875_v53, %v1996_v13  ;;  %v2004_v9 = vsel %vm1909_vm4, %v1883_v58, %v2003_v31  ;;  %v2871_v38 = vunpack.c.l.bf16 %v2950_v16  ;;  %v2872_v15 = vunpack.c.h.bf16 %v2950_v16 }
 0x167   : > { %v1998_v51 = vsel %vm1911_vm5, %v1876_v29, %v1997_v39  ;;  %v2005_v43 = vsel %vm1911_vm5, %v1884_v4, %v2004_v9  ;;  %v2875_v60 = vunpack.c.l.bf16 %v2951_v25  ;;  %v2876_v30 = vunpack.c.h.bf16 %v2951_v25 }
 0x168   : > { %v1999_v3 = vsel %vm1913_vm6, %v1877_v27, %v1998_v51  ;;  %v2006_v22 = vsel %vm1913_vm6, %v1885_v55, %v2005_v43  ;;  %v2879_v24 = vunpack.c.l.bf16 %v3853_v11  ;;  %v2880_v59 = vunpack.c.h.bf16 %v3853_v11 }
 0x169   : > { %v2000_v54 = vsel %vm1915_vm7, %v1878_v1, %v1999_v3  ;;  %v2007_v57 = vsel %vm1915_vm7, %v1886_v14, %v2006_v22  ;;  %v2883_v61 = vunpack.c.l.bf16 %v3858_v40  ;;  %v2884_v45 = vunpack.c.h.bf16 %v3858_v40 }
 0x16a   : > { %v2028_v36 = vpack.c.b16 %v2007_v57, %v2000_v54  ;;  %v2887_v50 = vunpack.c.l.bf16 %v3863_v7  ;;  %v2888_v62 = vunpack.c.h.bf16 %v3863_v7  ;;  %v2891_v47 = vunpack.c.l.bf16 %v3869_v28 }
 0x16b   : > { %v1268_v12 = vsel %vm483_vm0, %v2863_v18, 0.0  ;;  %v1275_v34 = vsel %vm483_vm0, %v2864_v32, 0.0  ;;  %v1282_v42 = vsel %vm483_vm0, %v2867_v8, 0.0  ;;  %v1289_v26 = vsel %vm483_vm0, %v2868_v35, 0.0 }
 0x16c   : > { %2992 = vmatprep.mubr.msk.bf16.mxu0 %vm483_vm0, %v2028_v36  ;;  %v1269_v49 = vrot.slane %v1268_v12, 4  ;;  %v1276_v23 = vrot.slane %v1275_v34, 4  ;;  %v1283_v33 = vrot.slane %v1282_v42, 4  ;;  %v1290_v20 = vrot.slane %v1289_v26, 4 }
 0x16d   : > { %v1296_v46 = vsel %vm483_vm0, %v2871_v38, 0.0  ;;  %v1303_v41 = vsel %vm483_vm0, %v2872_v15, 0.0  ;;  %v1310_v53 = vsel %vm483_vm0, %v2875_v60, 0.0  ;;  %v1317_v2 = vsel %vm483_vm0, %v2876_v30, 0.0 }
 0x16e   : > { %v1270_v29 = vadd.f32 %v1269_v49, %v1268_v12  ;;  %v1277_v27 = vadd.f32 %v1276_v23, %v1275_v34  ;;  %v1284_v37 = vadd.f32 %v1283_v33, %v1282_v42  ;;  %v1297_v48 = vrot.slane %v1296_v46, 4 }
 0x16f   : > { %v1291_v63 = vadd.f32 %v1290_v20, %v1289_v26  ;;  %v1304_v1 = vrot.slane %v1303_v41, 4  ;;  %v1311_v21 = vrot.slane %v1310_v53, 4  ;;  %v1318_v14 = vrot.slane %v1317_v2, 4 }
 0x170   : > { %v1271_v58 = vrot.slane %v1270_v29, 2  ;;  %v1278_v5 = vrot.slane %v1277_v27, 2  ;;  %v1285_v4 = vrot.slane %v1284_v37, 2  ;;  %v1298_v55 = vadd.f32 %v1297_v48, %v1296_v46 }
 0x171   : > { %v1292_v19 = vrot.slane %v1291_v63, 2  ;;  %v1305_v6 = vadd.f32 %v1304_v1, %v1303_v41  ;;  %v1312_v16 = vadd.f32 %v1311_v21, %v1310_v53  ;;  %v1319_v8 = vadd.f32 %v1318_v14, %v1317_v2 }
 0x172   : > { %v1272_v52 = vadd.f32 %v1271_v58, %v1270_v29  ;;  %v1279_v0 = vadd.f32 %v1278_v5, %v1277_v27  ;;  %v1286_v18 = vadd.f32 %v1285_v4, %v1284_v37  ;;  %v1299_v25 = vrot.slane %v1298_v55, 2 }
 0x173   : > { %v1293_v13 = vadd.f32 %v1292_v19, %v1291_v63  ;;  %v1306_v31 = vrot.slane %v1305_v6, 2  ;;  %v1313_v32 = vrot.slane %v1312_v16, 2  ;;  %v1320_v60 = vrot.slane %v1319_v8, 2 }
 0x174   : > { %v1273_v39 = vrot.slane %v1272_v52, 1  ;;  %v1280_v9 = vrot.slane %v1279_v0, 1  ;;  %v1287_v35 = vrot.slane %v1286_v18, 1  ;;  %v1300_v38 = vadd.f32 %v1299_v25, %v1298_v55 }
 0x175   : > { %v1294_v51 = vrot.slane %v1293_v13, 1  ;;  %v1307_v43 = vadd.f32 %v1306_v31, %v1305_v6  ;;  %v1314_v15 = vadd.f32 %v1313_v32, %v1312_v16  ;;  %v2892_v3 = vunpack.c.h.bf16 %v3869_v28 }
 0x176   : > { %v3889_v22 = vadd.f32 %v1273_v39, %v1272_v52  ;;  %v3891_v30 = vadd.f32 %v1280_v9, %v1279_v0  ;;  %v1301_v54 = vrot.slane %v1300_v38, 1  ;;  %v3893_v57 = vadd.f32 %v1287_v35, %v1286_v18 }
 0x177   : > { %v1308_v36 = vrot.slane %v1307_v43, 1  ;;  %v1315_v12 = vrot.slane %v1314_v15, 1  ;;  %v1321_v34 = vadd.f32 %v1320_v60, %v1319_v8  ;;  %v1295_v42 = vadd.f32 %v1294_v51, %v1293_v13 }
 0x178   : > { %v1324_v49 = vsel %vm483_vm0, %v2879_v24, 0.0  ;;  %v1331_v23 = vsel %vm483_vm0, %v2880_v59, 0.0  ;;  %v1338_v33 = vsel %vm483_vm0, %v2883_v61, 0.0  ;;  %v1302_v26 = vadd.f32 %v1301_v54, %v1300_v38 }
 0x179   : > { %v1309_v20 = vadd.f32 %v1308_v36, %v1307_v43  ;;  %v1316_v46 = vadd.f32 %v1315_v12, %v1314_v15  ;;  %v1325_v41 = vrot.slane %v1324_v49, 4  ;;  %v1332_v53 = vrot.slane %v1331_v23, 4 }
 0x17a   : > { %v1339_v29 = vrot.slane %v1338_v33, 4  ;;  %v1345_v27 = vsel %vm483_vm0, %v2884_v45, 0.0  ;;  %v1352_v11 = vsel %vm483_vm0, %v2887_v50, 0.0  ;;  %v1322_v37 = vrot.slane %v1321_v34, 1 }
 0x17b   : > { %v1326_v24 = vadd.f32 %v1325_v41, %v1324_v49  ;;  %v1346_v48 = vrot.slane %v1345_v27, 4  ;;  %v1353_v59 = vrot.slane %v1352_v11, 4  ;;  %v1333_v63 = vadd.f32 %v1332_v53, %v1331_v23 }
 0x17c   : > { %v1340_v61 = vadd.f32 %v1339_v29, %v1338_v33  ;;  %v1359_v1 = vsel %vm483_vm0, %v2888_v62, 0.0  ;;  %v1366_v40 = vsel %vm483_vm0, %v2891_v47, 0.0  ;;  %v1373_v55 = vsel %vm483_vm0, %v2892_v3, 0.0 }
 0x17d   : > { %v1327_v21 = vrot.slane %v1326_v24, 2  ;;  %v1347_v45 = vadd.f32 %v1346_v48, %v1345_v27  ;;  %v1354_v2 = vadd.f32 %v1353_v59, %v1352_v11  ;;  %v1360_v58 = vrot.slane %v1359_v1, 4 }
 0x17e   : > { %v1334_v5 = vrot.slane %v1333_v63, 2  ;;  %v1341_v50 = vrot.slane %v1340_v61, 2  ;;  %v1367_v4 = vrot.slane %v1366_v40, 4  ;;  %v1374_v0 = vrot.slane %v1373_v55, 4 }
 0x17f   : > { %v1328_v19 = vadd.f32 %v1327_v21, %v1326_v24  ;;  %v1348_v6 = vrot.slane %v1347_v45, 2  ;;  %v1355_v16 = vrot.slane %v1354_v2, 2  ;;  %v1361_v14 = vadd.f32 %v1360_v58, %v1359_v1 }
 0x180   : > { %v1335_v7 = vadd.f32 %v1334_v5, %v1333_v63  ;;  %v1342_v52 = vadd.f32 %v1341_v50, %v1340_v61  ;;  %v1368_v62 = vadd.f32 %v1367_v4, %v1366_v40  ;;  %v1375_v8 = vadd.f32 %v1374_v0, %v1373_v55 }
 0x181   : > { %v1329_v28 = vrot.slane %v1328_v19, 1  ;;  %v1349_v18 = vadd.f32 %v1348_v6, %v1347_v45  ;;  %v1356_v47 = vadd.f32 %v1355_v16, %v1354_v2  ;;  %v1362_v25 = vrot.slane %v1361_v14, 2 }
 0x182   : > { %v1336_v13 = vrot.slane %v1335_v7, 1  ;;  %v1343_v31 = vrot.slane %v1342_v52, 1  ;;  %v1369_v32 = vrot.slane %v1368_v62, 2  ;;  %v1323_v39 = vadd.f32 %v1322_v37, %v1321_v34 }
 0x183   : > { %v1350_v9 = vrot.slane %v1349_v18, 1  ;;  %v1357_v35 = vrot.slane %v1356_v47, 1  ;;  %v1363_v38 = vadd.f32 %v1362_v25, %v1361_v14  ;;  %v1330_v51 = vadd.f32 %v1329_v28, %v1328_v19 }
 0x184   : > { %v1337_v43 = vadd.f32 %v1336_v13, %v1335_v7  ;;  %v1370_v15 = vadd.f32 %v1369_v32, %v1368_v62  ;;  %v1376_v60 = vrot.slane %v1375_v8, 2  ;;  %v1344_v3 = vadd.f32 %v1343_v31, %v1342_v52  ;;  %v3919_v13 = vld [vmem:[%s4175_s2] ss:$0 sm:$0xff] }
 0x185   : > { %v1351_v54 = vadd.f32 %v1350_v9, %v1349_v18  ;;  %v1358_v36 = vadd.f32 %v1357_v35, %v1356_v47  ;;  %v1364_v12 = vrot.slane %v1363_v38, 1  ;;  %v1492_v33 = vmul.f32 0.125, %v3889_v22 }
 0x186   : > { %v1371_v49 = vrot.slane %v1370_v15, 1  ;;  %v1377_v23 = vadd.f32 %v1376_v60, %v1375_v8  ;;  %v1493_v41 = vmul.f32 0.125, %v3891_v30  ;;  %v1494_v34 = vmul.f32 0.125, %v3893_v57 }
 0x187   : > { %v1365_v53 = vadd.f32 %v1364_v12, %v1363_v38  ;;  %v1495_v29 = vmul.f32 0.125, %v1295_v42  ;;  %v1496_v27 = vmul.f32 0.125, %v1302_v26  ;;  %v1497_v24 = vmul.f32 0.125, %v1309_v20 }
 0x188   : > { %v1372_v11 = vadd.f32 %v1371_v49, %v1370_v15  ;;  %v1378_v37 = vrot.slane %v1377_v23, 1  ;;  %v1498_v48 = vmul.f32 0.125, %v1316_v46  ;;  %v1499_v59 = vmul.f32 0.125, %v1323_v39 }
 0x189   : > { %v1500_v63 = vmul.f32 0.125, %v1330_v51  ;;  %v1501_v61 = vmul.f32 0.125, %v1337_v43  ;;  %v1502_v1 = vmul.f32 0.125, %v1344_v3  ;;  %v1503_v21 = vmul.f32 0.125, %v1351_v54 }
 0x18a   : > { %v1379_v40 = vadd.f32 %v1378_v37, %v1377_v23  ;;  %v1504_v45 = vmul.f32 0.125, %v1358_v36  ;;  %v1505_v2 = vmul.f32 0.125, %v1365_v53  ;;  %v1506_v22 = vmul.f32 0.125, %v1372_v11 }
 0x18b   : > { %v1620_v58 = vpack.c.bf16 %v1492_v33, %v1492_v33  ;;  %v1621_v30 = vpack.c.bf16 %v1493_v41, %v1493_v41  ;;  %v1622_v5 = vpack.c.bf16 %v1494_v34, %v1494_v34  ;;  %v1623_v57 = vpack.c.bf16 %v1495_v29, %v1495_v29 }
 0x18c   : > { %v1507_v50 = vmul.f32 0.125, %v1379_v40  ;;  %v1624_v42 = vpack.c.bf16 %v1496_v27, %v1496_v27  ;;  %v1625_v26 = vpack.c.bf16 %v1497_v24, %v1497_v24  ;;  %v1626_v4 = vpack.c.bf16 %v1498_v48, %v1498_v48 }
 0x18d   : > { %v1628_v55 = vpack.c.bf16 %v1500_v63, %v1500_v63  ;;  %v1629_v20 = vpack.c.bf16 %v1501_v61, %v1501_v61  ;;  %v1630_v46 = vpack.c.bf16 %v1502_v1, %v1502_v1  ;;  %v1627_v19 = vpack.c.bf16 %v1499_v59, %v1499_v59 }
 0x18e   : > { %v1631_v6 = vpack.c.bf16 %v1503_v21, %v1503_v21  ;;  %v1632_v16 = vpack.c.bf16 %v1504_v45, %v1504_v45  ;;  %v1633_v14 = vpack.c.bf16 %v1505_v2, %v1505_v2  ;;  %v1634_v7 = vpack.c.bf16 %v1506_v22, %v1506_v22 }
 0x18f   : > { %v1635_v52 = vpack.c.bf16 %v1507_v50, %v1507_v50  ;;  %v1887_v62 = vunpack.c.l.b16 %v1620_v58  ;;  %v1888_v0 = vunpack.c.l.b16 %v1621_v30  ;;  %v1889_v28 = vunpack.c.l.b16 %v1622_v5 }
 0x190   : > { %v1890_v18 = vunpack.c.l.b16 %v1623_v57  ;;  %v1891_v47 = vunpack.c.l.b16 %v1624_v42  ;;  %v1892_v25 = vunpack.c.l.b16 %v1625_v26  ;;  %v1893_v31 = vunpack.c.l.b16 %v1626_v4 }
 0x191   : > { %v1895_v32 = vunpack.c.l.b16 %v1628_v55  ;;  %v1896_v8 = vunpack.c.l.b16 %v1629_v20  ;;  %v1897_v39 = vunpack.c.l.b16 %v1630_v46  ;;  %v1894_v9 = vunpack.c.l.b16 %v1627_v19 }
 0x192   : > { %v1898_v35 = vunpack.c.l.b16 %v1631_v6  ;;  %v1899_v38 = vunpack.c.l.b16 %v1632_v16  ;;  %v1900_v51 = vunpack.c.l.b16 %v1633_v14  ;;  %v1901_v43 = vunpack.c.l.b16 %v1634_v7 }
 0x193   : > { %v2008_v15 = vsel %vm1903_vm1, %v1888_v0, %v1887_v62  ;;  %v2015_v60 = vsel %vm1903_vm1, %v1896_v8, %v1895_v32  ;;  %v2109_v3 = vadd.f32 %v3828_v17, %v3919_v13  ;;  %v2101_v12 = vadd.f32 %v3919_v13, %v3830_v10  ;;  %v3963_v8 = vld [vmem:[%s4177_s4] ss:$0 sm:$0xff] }
 0x194   : > { %v2009_v54 = vsel %vm1905_vm2, %v1889_v28, %v2008_v15  ;;  %v2016_v36 = vsel %vm1905_vm2, %v1897_v39, %v2015_v60  ;;  %v2112_v49 = vadd.f32 %v3832_v56, %v3919_v13  ;;  %v1902_v23 = vunpack.c.l.b16 %v1635_v52 }
 0x195   : > { %v2010_v33 = vsel %vm1907_vm3, %v1890_v18, %v2009_v54  ;;  %v2017_v41 = vsel %vm1907_vm3, %v1898_v35, %v2016_v36  ;;  %v2104_v53 = vadd.f32 %v3919_v13, %v3834_v44  ;;  %v2165_v29 = vmax.f32 %v2109_v3, 0.0 }
 0x196   : > { %v2011_v17 = vsel %vm1909_vm4, %v1891_v47, %v2010_v33  ;;  %v2018_v34 = vsel %vm1909_vm4, %v1899_v38, %v2017_v41  ;;  %v2166_v27 = vmax.f32 %v2112_v49, 0.0  ;;  %v2163_v37 = vmax.f32 %v2101_v12, 0.0 }
 0x197   : > { %v2012_v11 = vsel %vm1911_vm5, %v1892_v25, %v2011_v17  ;;  %v2019_v10 = vsel %vm1911_vm5, %v1900_v51, %v2018_v34  ;;  %v2164_v56 = vmax.f32 %v2104_v53, 0.0 }
 0x198   : > { %v2013_v24 = vsel %vm1913_vm6, %v1893_v31, %v2012_v11  ;;  %v2020_v48 = vsel %vm1913_vm6, %v1901_v43, %v2019_v10  ;;  %v2180_v59 = vpack.c.bf16 %v2166_v27, %v2165_v29  ;;  %v2331_v31 = vlaneseq }
 0x199   : > { %v2014_v63 = vsel %vm1915_vm7, %v1894_v9, %v2013_v24  ;;  %v2021_v44 = vsel %vm1915_vm7, %v1902_v23, %v2020_v48  ;;  %v2179_v61 = vpack.c.bf16 %v2164_v56, %v2163_v37 }
 0x19a   : > { %v2029_v1 = vpack.c.b16 %v2021_v44, %v2014_v63  ;;  %v3958_v32 = vand.u32 127, %v2331_v31 }
 0x19b   : > { %3000 = vmatprep.mubr.msk.bf16.mxu1 %vm483_vm0, %v2179_v61 }
 0x19c   : > { %2993 = vmatmul.mubr.msk.bf16.gmra.mrb[12].mxu0 %vm483_vm0, %v2029_v1  ;;  %3001 = vmatmul.mubr.msk.bf16.vlgmr.msra.gmra.mrb[0].mxu1 %vm483_vm0, %v2180_v59  ;;  %vm2333_vm8 = vcmp.lt.s32.totalorder %v3958_v32, 4 }
 0x1b0   : > { %v2986_v40 = vpop.f32.mrb[4].mxu0 }
 0x1b1   : > { %v2125_v21 = vadd.f32 %v2986_v40, %v3919_v13  ;;  %v2116_v45 = vpop.f32.mrb[5].mxu0 }
 0x1b2   : > { %v2117_v2 = vadd.f32 %v3919_v13, %v2116_v45  ;;  %v2987_v22 = vpop.f32.mrb[6].mxu0 }
 0x1b3   : > { %v2169_v58 = vmax.f32 %v2125_v21, 0.0  ;;  %v2128_v30 = vadd.f32 %v2987_v22, %v3919_v13  ;;  %v2119_v5 = vpop.f32.mrb[7].mxu0 }
 0x1b4   : > { %v2120_v50 = vadd.f32 %v3919_v13, %v2119_v5  ;;  %v2167_v42 = vmax.f32 %v2117_v2, 0.0 }
 0x1b5   : > { %v2170_v57 = vmax.f32 %v2128_v30, 0.0 }
 0x1b6   : > { %v2168_v26 = vmax.f32 %v2120_v50, 0.0 }
 0x1b7   : > { %v2182_v4 = vpack.c.bf16 %v2170_v57, %v2169_v58 }
 0x1b8   : > { %v2181_v55 = vpack.c.bf16 %v2168_v26, %v2167_v42 }
 0x1ba   : > { %3004 = vmatprep.mubr.msk.bf16.mxu1 %vm483_vm0, %v2181_v55 }
 0x1bb   : > { %3005 = vmatmul.mubr.msk.bf16.gmra.mrb[4].mxu1 %vm483_vm0, %v2182_v4 }
 0x210   : > { %v2990_v20 = vpop.f32.mrb[8].mxu0 }
 0x211   : > { %v2141_v46 = vadd.f32 %v2990_v20, %v3919_v13  ;;  %v2132_v19 = vpop.f32.mrb[9].mxu0 }
 0x212   : > { %v2133_v6 = vadd.f32 %v3919_v13, %v2132_v19  ;;  %v2991_v16 = vpop.f32.mrb[10].mxu0 }
 0x213   : > { %v2173_v14 = vmax.f32 %v2141_v46, 0.0  ;;  %v2144_v7 = vadd.f32 %v2991_v16, %v3919_v13  ;;  %v2135_v52 = vpop.f32.mrb[11].mxu0 }
 0x214   : > { %v2136_v62 = vadd.f32 %v3919_v13, %v2135_v52  ;;  %v2171_v28 = vmax.f32 %v2133_v6, 0.0 }
 0x215   : > { %v2174_v0 = vmax.f32 %v2144_v7, 0.0 }
 0x216   : > { %v2172_v18 = vmax.f32 %v2136_v62, 0.0 }
 0x217   : > { %v2184_v47 = vpack.c.bf16 %v2174_v0, %v2173_v14 }
 0x218   : > { %v2183_v25 = vpack.c.bf16 %v2172_v18, %v2171_v28 }
 0x21a   : > { %3008 = vmatprep.mubr.msk.bf16.mxu1 %vm483_vm0, %v2183_v25 }
 0x21b   : > { %3009 = vmatmul.mubr.msk.bf16.gmra.mrb[8].mxu1 %vm483_vm0, %v2184_v47 }
 0x26f   : > { %v2994_v39 = vpop.f32.mrb[12].mxu0  ;;  %v3002_v9 = vpop.f32.mrb[0].mxu1 }
 0x270   : > { %v2157_v35 = vadd.f32 %v2994_v39, %v3919_v13  ;;  %v2148_v38 = vpop.f32.mrb[13].mxu0  ;;  %v2277_v51 = vadd.f32 %v3002_v9, %v3963_v8  ;;  %v2268_v43 = vpop.f32.mrb[1].mxu1 }
 0x271   : > { %v2149_v15 = vadd.f32 %v3919_v13, %v2148_v38  ;;  %v2995_v60 = vpop.f32.mrb[14].mxu0  ;;  %v2269_v3 = vadd.f32 %v3963_v8, %v2268_v43  ;;  %v3003_v54 = vpop.f32.mrb[2].mxu1 }
 0x272   : > { %v2177_v36 = vmax.f32 %v2157_v35, 0.0  ;;  %v2160_v12 = vadd.f32 %v2995_v60, %v3919_v13  ;;  %v2151_v49 = vpop.f32.mrb[15].mxu0  ;;  %v2280_v23 = vadd.f32 %v3003_v54, %v3963_v8  ;;  %v2271_v33 = vpop.f32.mrb[3].mxu1  ;;  %v2336_v41 = vsel %vm2333_vm8, %v2277_v51, -1e+30 }
 0x273   : > { %v2152_v53 = vadd.f32 %v3919_v13, %v2151_v49  ;;  %v2272_v17 = vadd.f32 %v3963_v8, %v2271_v33  ;;  %2354 = vmax.xlane.f32.xlu1 %v2336_v41  ;;  %v2334_v34 = vsel %vm2333_vm8, %v2269_v3, -1e+30  ;;  %v2175_v27 = vmax.f32 %v2149_v15, 0.0 }
 0x274   : > { %v2178_v29 = vmax.f32 %v2160_v12, 0.0  ;;  %2350 = vmax.xlane.f32.xlu0 %v2334_v34  ;;  %v2337_v37 = vsel %vm2333_vm8, %v2280_v23, -1e+30 }
 0x275   : > { %v2176_v11 = vmax.f32 %v2152_v53, 0.0  ;;  %v2335_v24 = vsel %vm2333_vm8, %v2272_v17, -1e+30 }
 0x276   : > { %v2186_v10 = vpack.c.bf16 %v2178_v29, %v2177_v36 }
 0x277   : > { %v2185_v56 = vpack.c.bf16 %v2176_v11, %v2175_v27  ;;  %2356 = vmax.xlane.f32.xlu1 %v2337_v37 }
 0x278   : > { %2352 = vmax.xlane.f32.xlu0 %v2335_v24 }
 0x279   : > { %3012 = vmatprep.mubr.msk.bf16.mxu1 %vm483_vm0, %v2185_v56 }
 0x27a   : > { %3013 = vmatmul.mubr.msk.bf16.gmra.mrb[12].mxu1 %vm483_vm0, %v2186_v10 }
 0x28e   : > { %v3006_v13 = vpop.f32.mrb[4].mxu1 }
 0x28f   : > { %v2293_v48 = vadd.f32 %v3006_v13, %v3963_v8  ;;  %v2284_v59 = vpop.f32.mrb[5].mxu1 }
 0x290   : > { %v3007_v63 = vpop.f32.mrb[6].mxu1  ;;  %v2285_v44 = vadd.f32 %v3963_v8, %v2284_v59 }
 0x291   : > { %v2296_v61 = vadd.f32 %v3007_v63, %v3963_v8  ;;  %v2287_v1 = vpop.f32.mrb[7].mxu1  ;;  %v2340_v40 = vsel %vm2333_vm8, %v2293_v48, -1e+30 }
 0x292   : > { %2362 = vmax.xlane.f32.xlu0 %v2340_v40  ;;  %v2288_v21 = vadd.f32 %v3963_v8, %v2287_v1  ;;  %v2338_v2 = vsel %vm2333_vm8, %v2285_v44, -1e+30 }
 0x293   : > { %v2341_v45 = vsel %vm2333_vm8, %v2296_v61, -1e+30 }
 0x294   : > { %2364 = vmax.xlane.f32.xlu1 %v2341_v45  ;;  %v2339_v22 = vsel %vm2333_vm8, %v2288_v21, -1e+30 }
 0x296   : > { %2358 = vmax.xlane.f32.xlu0 %v2338_v2 }
 0x298   : > { %2360 = vmax.xlane.f32.xlu1 %v2339_v22 }
 0x2ee   : > { %v3010_v58 = vpop.f32.mrb[8].mxu1 }
 0x2ef   : > { %v2309_v30 = vadd.f32 %v3010_v58, %v3963_v8  ;;  %v2300_v5 = vpop.f32.mrb[9].mxu1 }
 0x2f0   : > { %v3011_v50 = vpop.f32.mrb[10].mxu1  ;;  %v2301_v57 = vadd.f32 %v3963_v8, %v2300_v5 }
 0x2f1   : > { %v2312_v42 = vadd.f32 %v3011_v50, %v3963_v8  ;;  %v2303_v26 = vpop.f32.mrb[11].mxu1  ;;  %v4001_v4 = vsel %vm2333_vm8, %v2309_v30, -1e+30 }
 0x2f2   : > { %2370 = vmax.xlane.f32.xlu0 %v4001_v4  ;;  %v2304_v55 = vadd.f32 %v3963_v8, %v2303_v26  ;;  %v4012_v46 = vsel %vm2333_vm8, %v2301_v57, -1e+30 }
 0x2f3   : > { %v4007_v20 = vsel %vm2333_vm8, %v2312_v42, -1e+30 }
 0x2f4   : > { %2372 = vmax.xlane.f32.xlu1 %v4007_v20  ;;  %v4017_v19 = vsel %vm2333_vm8, %v2304_v55, -1e+30 }
 0x2f6   : > { %2366 = vmax.xlane.f32.xlu0 %v4012_v46 }
 0x2f8   : > { %2368 = vmax.xlane.f32.xlu1 %v4017_v19 }
 0x300   : > { %v2355_v16 = vpop.xlane.xlu1 %2354 }
 0x301   : > { %v2351_v6 = vpop.xlane.xlu0 %2350  ;;  %v4020_v52 = vsub.f32 %v2336_v41, %v2355_v16 }
 0x302   : > { %v4025_v18 = vsub.f32 %v2334_v34, %v2351_v6 }
 0x303   : > { %v2402_v28 = vmul.f32 1.442695, %v4020_v52 }
 0x304   : > { %v2357_v7 = vpop.xlane.xlu1 %2356  ;;  %v2398_v15 = vmul.f32 1.442695, %v4025_v18 }
 0x305   : > { %v2353_v14 = vpop.xlane.xlu0 %2352  ;;  %v4022_v62 = vsub.f32 %v2337_v37, %v2357_v7  ;;  %3061 = vpow2.f32 %v2402_v28 }
 0x306   : > { %v4028_v25 = vsub.f32 %v2335_v24, %v2353_v14 }
 0x307   : > { %v2404_v47 = vmul.f32 1.442695, %v4022_v62 }
 0x308   : > { %v2400_v3 = vmul.f32 1.442695, %v4028_v25 }
 0x309   : > { %3063 = vpow2.f32 %v2404_v47 }
 0x30a   : > { %3065 = vpow2.f32 %v2398_v15 }
 0x30b   : > { %3067 = vpow2.f32 %v2400_v3 }
 0x30f   : > { %v3062_v10 = vpop.eup %3061 }
 0x313   : > { %v3064_v37 = vpop.eup %3063 }
 0x314   : > { %v3066_v24 = vpop.eup %3065 }
 0x315   : > { %v3068_v13 = vpop.eup %3067 }
 0x31f   : > { %v2363_v0 = vpop.xlane.xlu0 %2362 }
 0x320   : > { %v4030_v31 = vsub.f32 %v2340_v40, %v2363_v0 }
 0x321   : > { %v2365_v39 = vpop.xlane.xlu1 %2364 }
 0x322   : > { %v2410_v54 = vmul.f32 1.442695, %v4030_v31  ;;  %v4036_v36 = vsub.f32 %v2341_v45, %v2365_v39 }
 0x323   : > { %v2359_v38 = vpop.xlane.xlu0 %2358 }
 0x324   : > { %v4042_v33 = vsub.f32 %v2338_v2, %v2359_v38  ;;  %v2412_v34 = vmul.f32 1.442695, %v4036_v36  ;;  %3069 = vpow2.f32 %v2410_v54 }
 0x325   : > { %v2361_v41 = vpop.xlane.xlu1 %2360 }
 0x326   : > { %v2406_v27 = vmul.f32 1.442695, %v4042_v33  ;;  %v4051_v11 = vsub.f32 %v2339_v22, %v2361_v41  ;;  %3071 = vpow2.f32 %v2412_v34 }
 0x328   : > { %3073 = vpow2.f32 %v2406_v27  ;;  %v2408_v56 = vmul.f32 1.442695, %v4051_v11 }
 0x32a   : > { %3075 = vpow2.f32 %v2408_v56 }
 0x32e   : > { %v3070_v48 = vpop.eup %3069 }
 0x330   : > { %v3072_v59 = vpop.eup %3071 }
 0x332   : > { %v3074_v63 = vpop.eup %3073 }
 0x334   : > { %v3076_v32 = vpop.eup %3075 }
 0x34d   : > { %v3014_v9 = vpop.f32.mrb[12].mxu1 }
 0x34e   : > { %v2316_v35 = vpop.f32.mrb[13].mxu1  ;;  %v2325_v12 = vadd.f32 %v3014_v9, %v3963_v8 }
 0x34f   : > { %v2317_v51 = vadd.f32 %v3963_v8, %v2316_v35  ;;  %v3015_v43 = vpop.f32.mrb[14].mxu1 }
 0x350   : > { %v2319_v60 = vpop.f32.mrb[15].mxu1  ;;  %v2328_v53 = vadd.f32 %v3015_v43, %v3963_v8  ;;  %v2348_v29 = vsel %vm2333_vm8, %v2325_v12, -1e+30 }
 0x351   : > { %v2320_v49 = vadd.f32 %v3963_v8, %v2319_v60  ;;  %v2346_v23 = vsel %vm2333_vm8, %v2317_v51, -1e+30 }
 0x352   : > { %2374 = vmax.xlane.f32.xlu0 %v2346_v23  ;;  %v2349_v8 = vsel %vm2333_vm8, %v2328_v53, -1e+30 }
 0x353   : > { %v2347_v17 = vsel %vm2333_vm8, %v2320_v49, -1e+30 }
 0x354   : > { %2376 = vmax.xlane.f32.xlu1 %v2347_v17 }
 0x356   : > { %2378 = vmax.xlane.f32.xlu0 %v2348_v29 }
 0x358   : > { %2380 = vmax.xlane.f32.xlu1 %v2349_v8 }
 0x35a   : > { %2434 = vadd.xlane.f32.xlu0 %v3062_v10 }
 0x35c   : > { %2436 = vadd.xlane.f32.xlu1 %v3064_v37 }
 0x35e   : > { %2430 = vadd.xlane.f32.xlu0 %v3066_v24 }
 0x360   : > { %2432 = vadd.xlane.f32.xlu1 %v3068_v13 }
 0x362   : > { %2442 = vadd.xlane.f32.xlu0 %v3070_v48 }
 0x364   : > { %2444 = vadd.xlane.f32.xlu1 %v3072_v59 }
 0x366   : > { %2438 = vadd.xlane.f32.xlu0 %v3074_v63 }
 0x368   : > { %2440 = vadd.xlane.f32.xlu1 %v3076_v32 }
 0x37f   : > { %v2371_v44 = vpop.xlane.xlu0 %2370 }
 0x380   : > { %v4057_v61 = vsub.f32 %v4001_v4, %v2371_v44 }
 0x381   : > { %v2373_v1 = vpop.xlane.xlu1 %2372 }
 0x382   : > { %v2418_v40 = vmul.f32 1.442695, %v4057_v61  ;;  %v4061_v21 = vsub.f32 %v4007_v20, %v2373_v1 }
 0x383   : > { %v2367_v45 = vpop.xlane.xlu0 %2366 }
 0x384   : > { %3077 = vpow2.f32 %v2418_v40  ;;  %v2420_v2 = vmul.f32 1.442695, %v4061_v21  ;;  %v4065_v22 = vsub.f32 %v4012_v46, %v2367_v45 }
 0x385   : > { %v2369_v58 = vpop.xlane.xlu1 %2368 }
 0x386   : > { %3079 = vpow2.f32 %v2420_v2  ;;  %v2414_v30 = vmul.f32 1.442695, %v4065_v22  ;;  %v4069_v5 = vsub.f32 %v4017_v19, %v2369_v58 }
 0x388   : > { %3081 = vpow2.f32 %v2414_v30  ;;  %v2416_v50 = vmul.f32 1.442695, %v4069_v5 }
 0x38a   : > { %3083 = vpow2.f32 %v2416_v50 }
 0x38e   : > { %v3078_v57 = vpop.eup %3077 }
 0x38f   : > { %2450 = vadd.xlane.f32.xlu0 %v3078_v57 }
 0x390   : > { %v3080_v42 = vpop.eup %3079 }
 0x391   : > { %2452 = vadd.xlane.f32.xlu1 %v3080_v42 }
 0x392   : > { %v3082_v26 = vpop.eup %3081 }
 0x393   : > { %2446 = vadd.xlane.f32.xlu0 %v3082_v26 }
 0x394   : > { %v3084_v4 = vpop.eup %3083 }
 0x395   : > { %2448 = vadd.xlane.f32.xlu1 %v3084_v4 }
 0x3df   : > { %v2375_v55 = vpop.xlane.xlu0 %2374 }
 0x3e0   : > { %v4072_v20 = vsub.f32 %v2346_v23, %v2375_v55 }
 0x3e1   : > { %v2377_v46 = vpop.xlane.xlu1 %2376 }
 0x3e2   : > { %v2422_v6 = vmul.f32 1.442695, %v4072_v20  ;;  %v4075_v19 = vsub.f32 %v2347_v17, %v2377_v46 }
 0x3e3   : > { %v2379_v16 = vpop.xlane.xlu0 %2378 }
 0x3e4   : > { %3085 = vpow2.f32 %v2422_v6  ;;  %v2424_v14 = vmul.f32 1.442695, %v4075_v19  ;;  %v4078_v7 = vsub.f32 %v2348_v29, %v2379_v16 }
 0x3e5   : > { %v2381_v0 = vpop.xlane.xlu1 %2380 }
 0x3e6   : > { %3087 = vpow2.f32 %v2424_v14  ;;  %v2426_v28 = vmul.f32 1.442695, %v4078_v7  ;;  %v4081_v47 = vsub.f32 %v2349_v8, %v2381_v0 }
 0x3e7   : > { %v2435_v39 = vpop.xlane.xlu0 %2434 }
 0x3e8   : > { %3089 = vpow2.f32 %v2426_v28  ;;  %v2428_v9 = vmul.f32 1.442695, %v4081_v47 }
 0x3e9   : > { %3091 = vlog2.f32 %v2435_v39  ;;  %v2437_v35 = vpop.xlane.xlu1 %2436 }
 0x3ea   : > { %3093 = vpow2.f32 %v2428_v9 }
 0x3eb   : > { %3095 = vlog2.f32 %v2437_v35  ;;  %v2431_v38 = vpop.xlane.xlu0 %2430 }
 0x3ec   : > { %3097 = vlog2.f32 %v2431_v38 }
 0x3ed   : > { %v2433_v51 = vpop.xlane.xlu1 %2432 }
 0x3ee   : > { %v3086_v43 = vpop.eup %3085  ;;  %3099 = vlog2.f32 %v2433_v51 }
 0x3ef   : > { %2454 = vadd.xlane.f32.xlu0 %v3086_v43  ;;  %v2443_v15 = vpop.xlane.xlu0 %2442 }
 0x3f0   : > { %v3088_v60 = vpop.eup %3087  ;;  %3101 = vlog2.f32 %v2443_v15 }
 0x3f1   : > { %2456 = vadd.xlane.f32.xlu1 %v3088_v60  ;;  %v2445_v3 = vpop.xlane.xlu1 %2444 }
 0x3f2   : > { %v3090_v54 = vpop.eup %3089  ;;  %3103 = vlog2.f32 %v2445_v3 }
 0x3f3   : > { %v3092_v12 = vpop.eup %3091  ;;  %2458 = vadd.xlane.f32.xlu0 %v3090_v54  ;;  %v2439_v49 = vpop.xlane.xlu0 %2438 }
 0x3f4   : > { %v3094_v23 = vpop.eup %3093  ;;  %v2467_v41 = vmul.f32 0.6931472, %v3092_v12  ;;  %3105 = vlog2.f32 %v2439_v49 }
 0x3f5   : > { %v3096_v53 = vpop.eup %3095  ;;  %2460 = vadd.xlane.f32.xlu1 %v3094_v23  ;;  %v2441_v17 = vpop.xlane.xlu1 %2440 }
 0x3f6   : > { %v3098_v34 = vpop.eup %3097  ;;  %v2496_v29 = vsub.f32 %v4020_v52, %v2467_v41  ;;  %v2469_v27 = vmul.f32 0.6931472, %v3096_v53  ;;  %3107 = vlog2.f32 %v2441_v17 }
 0x3f7   : > { %v2463_v10 = vmul.f32 0.6931472, %v3098_v34 }
 0x3f8   : > { %v3100_v8 = vpop.eup %3099  ;;  %2512 = vst [vmem:[%s4088_s8 + $0x10] sm:$0xff] %v2496_v29  ;;  %v2497_v37 = vsub.f32 %v4022_v62, %v2469_v27 }
 0x3f9   : > { %v2494_v56 = vsub.f32 %v4025_v18, %v2463_v10  ;;  %v2465_v24 = vmul.f32 0.6931472, %v3100_v8 }
 0x3fa   : > { %v3102_v13 = vpop.eup %3101  ;;  %2513 = vst [vmem:[%s4088_s8 + $0x18] sm:$0xff] %v2497_v37 }
 0x3fb   : > { %2510 = vst [vmem:[%s4088_s8] sm:$0xff] %v2494_v56  ;;  %v2495_v52 = vsub.f32 %v4028_v25, %v2465_v24  ;;  %v2475_v48 = vmul.f32 0.6931472, %v3102_v13 }
 0x3fc   : > { %v3104_v59 = vpop.eup %3103 }
 0x3fd   : > { %2511 = vst [vmem:[%s4088_s8 + $0x8] sm:$0xff] %v2495_v52  ;;  %v2500_v63 = vsub.f32 %v4030_v31, %v2475_v48  ;;  %v2477_v32 = vmul.f32 0.6931472, %v3104_v59 }
 0x3fe   : > { %v3106_v44 = vpop.eup %3105 }
 0x3ff   : > { %2516 = vst [vmem:[%s4088_s8 + $0x30] sm:$0xff] %v2500_v63  ;;  %v2501_v62 = vsub.f32 %v4036_v36, %v2477_v32  ;;  %v2471_v18 = vmul.f32 0.6931472, %v3106_v44 }
 0x400   : > { %v3108_v1 = vpop.eup %3107 }
 0x401   : > { %2517 = vst [vmem:[%s4088_s8 + $0x38] sm:$0xff] %v2501_v62  ;;  %v2498_v40 = vsub.f32 %v4042_v33, %v2471_v18  ;;  %v2473_v45 = vmul.f32 0.6931472, %v3108_v1 }
 0x403   : > { %2514 = vst [vmem:[%s4088_s8 + $0x20] sm:$0xff] %v2498_v40  ;;  %v2499_v25 = vsub.f32 %v4051_v11, %v2473_v45 }
 0x405   : > { %2515 = vst [vmem:[%s4088_s8 + $0x28] sm:$0xff] %v2499_v25 }
 0x41c   : > { %v2451_v2 = vpop.xlane.xlu0 %2450 }
 0x41d   : > { %3109 = vlog2.f32 %v2451_v2 }
 0x41e   : > { %v2453_v58 = vpop.xlane.xlu1 %2452 }
 0x41f   : > { %3111 = vlog2.f32 %v2453_v58 }
 0x420   : > { %v2447_v31 = vpop.xlane.xlu0 %2446 }
 0x421   : > { %3113 = vlog2.f32 %v2447_v31 }
 0x422   : > { %v2449_v36 = vpop.xlane.xlu1 %2448 }
 0x423   : > { %3115 = vlog2.f32 %v2449_v36 }
 0x427   : > { %v3110_v30 = vpop.eup %3109 }
 0x428   : > { %v2483_v50 = vmul.f32 0.6931472, %v3110_v30 }
 0x429   : > { %v3112_v33 = vpop.eup %3111 }
 0x42a   : > { %v2504_v57 = vsub.f32 %v4057_v61, %v2483_v50  ;;  %v2485_v42 = vmul.f32 0.6931472, %v3112_v33 }
 0x42b   : > { %v3114_v11 = vpop.eup %3113 }
 0x42c   : > { %2520 = vst [vmem:[%s4088_s8 + $0x50] sm:$0xff] %v2504_v57  ;;  %v2505_v26 = vsub.f32 %v4061_v21, %v2485_v42  ;;  %v2479_v4 = vmul.f32 0.6931472, %v3114_v11 }
 0x42d   : > { %v3116_v55 = vpop.eup %3115 }
 0x42e   : > { %2521 = vst [vmem:[%s4088_s8 + $0x58] sm:$0xff] %v2505_v26  ;;  %v2502_v46 = vsub.f32 %v4065_v22, %v2479_v4  ;;  %v2481_v6 = vmul.f32 0.6931472, %v3116_v55 }
 0x430   : > { %2518 = vst [vmem:[%s4088_s8 + $0x40] sm:$0xff] %v2502_v46  ;;  %v2503_v16 = vsub.f32 %v4069_v5, %v2481_v6 }
 0x432   : > { %2519 = vst [vmem:[%s4088_s8 + $0x48] sm:$0xff] %v2503_v16 }
 0x47c   : > { %v2455_v14 = vpop.xlane.xlu0 %2454 }
 0x47d   : > { %3117 = vlog2.f32 %v2455_v14 }
 0x47e   : > { %v2457_v61 = vpop.xlane.xlu1 %2456 }
 0x47f   : > { %3119 = vlog2.f32 %v2457_v61 }
 0x480   : > { %v2459_v0 = vpop.xlane.xlu0 %2458 }
 0x481   : > { %3121 = vlog2.f32 %v2459_v0 }
 0x482   : > { %v2461_v21 = vpop.xlane.xlu1 %2460 }
 0x483   : > { %3123 = vlog2.f32 %v2461_v21 }
 0x487   : > { %v3118_v28 = vpop.eup %3117 }
 0x488   : > { %v2487_v39 = vmul.f32 0.6931472, %v3118_v28 }
 0x489   : > { %v3120_v22 = vpop.eup %3119 }
 0x48a   : > { %v2506_v9 = vsub.f32 %v4072_v20, %v2487_v39  ;;  %v2489_v5 = vmul.f32 0.6931472, %v3120_v22 }
 0x48b   : > { %v3122_v35 = vpop.eup %3121 }
 0x48c   : > { %2522 = vst [vmem:[%s4088_s8 + $0x60] sm:$0xff] %v2506_v9  ;;  %v2507_v38 = vsub.f32 %v4075_v19, %v2489_v5  ;;  %v2491_v51 = vmul.f32 0.6931472, %v3122_v35 }
 0x48d   : > { %v3124_v43 = vpop.eup %3123 }
 0x48e   : > { %2523 = vst [vmem:[%s4088_s8 + $0x68] sm:$0xff] %v2507_v38  ;;  %v2508_v15 = vsub.f32 %v4078_v7, %v2491_v51  ;;  %v2493_v60 = vmul.f32 0.6931472, %v3124_v43 }
 0x490   : > { %2524 = vst [vmem:[%s4088_s8 + $0x70] sm:$0xff] %v2508_v15  ;;  %v2509_v20 = vsub.f32 %v4081_v47, %v2493_v60 }
 0x492   : > { %2525 = vst [vmem:[%s4088_s8 + $0x78] sm:$0xff] %v2509_v20 }
 0x493   : > { %3138 = shalt.err (!%p3135_p3)
}
 0x494   : > { %s3139_s23 = scalar_lea.hbm %s4123_s13, 2048  ;;  %s3143_s30 = scalar_lea.hbm %s4178_s5, 4096 }
 0x495   : > { %p3140_p4 = scmp.ne.s32.totalorder %s4123_s13, %s3139_s23  ;;  %p3144_p9 = scmp.lt.u32.totalorder %s4123_s13, %s4178_s5 }
 0x496   : > { %p3145_p10 = scmp.lt.u32.totalorder %s3143_s30, %s3139_s23  ;;  %p3147_p12 = scmp.lt.u32.totalorder %s3139_s23, %s4123_s13 }
 0x497   : > { %p3141_p7 = pnand %p3140_p4, %p3260_p5 }
 0x498   : > { %p3146_p11 = por %p3145_p10, %p3144_p9 }
 0x499   : > { %p3142_p8 = pneg %p3141_p7 }
 0x49a   : > { %p3148_p13 = por %p3147_p12, %p3146_p11 }
 0x49c   : > { %p3149_p0 = pnand %p3148_p13, %p3142_p8 }
 0x49e   : > { %3152 = shalt.err (!%p3149_p0)
}
 0x49f   : > { %s3190_s8 = smov 128   ;;  %s3191_s9 = smov 8  }
 0x4a0   : > { %3016 = dma.vmem_to_hbm [thread:$0]  (%p3260_p5), %s4125_s10, 2048, %s4123_s13, %s4132_s22, %s3190_s8, %s3190_s8, %s3191_s9  }
 0x4a1 PF: > { %p3022_p1 = scmp.ge.s32.totalorder %s3187_s21, 2  ;;  %s2555_s11 = sand.u32 1, %s3175_s18  }
 0x4a2   : > { %s2556_s12 = scalar_lea.sflag [#allocation3], %s2555_s11 }
 0x4a3   : > { %p3019_p2 = pnand %p3022_p1, %p3264_p6 }
 0x4a5   : > { %3170 = dma.done.wait (!%p3019_p2), %s2556_s12, 2048  }
 0x4a6   : > { %3172 = vsyncadd (!%p3019_p2), %s2556_s12, 4294965248  ;;  %p15_p3 = scmp.ge.s32.totalorder %s3247_s24, 4   ;;  %s4181_s18 = smov %s3179_s19 }
 0x4a7   : > { %s4182_s19 = smov %s3183_s20  ;;  %s4183_s20 = smov %s3258_s27 }
 0x4a8   : > { %s4184_s21 = smov %s3247_s24  ;;  %17 = sbr.rel (!%p15_p3) target bundleno = 3 (0x3), region = 75 }
 0x4af   :  { %2561 = vsyncpa [#allocation3], 1 }
 0x4b0   :  { %2563 = vsyncpa [#allocation3 + $0x1], 1 }

</bundles_post_ra>
